<compile_context>
chip_gen: v5e
topology: v5e:2x2
jax: 0.10.0
libtpu: 0.0.40
codegen_flags: <defaults>
</compile_context>

<pallas_src>
import math

import jax
import jax.numpy as jnp
from jax.experimental import pallas as pl
from jax.experimental.pallas import tpu as pltpu

# Model hyper-parameters (small, consistent with the module's __init__).
D_MODEL = 32
N_HEAD = 4
DIM_FF = 64
HEAD_DIM = D_MODEL // N_HEAD
EPS = 1e-5


# ---------------------------------------------------------------------------
# Shared math helpers.
# ---------------------------------------------------------------------------
def _layer_norm(x, w, b):
    # x: (N, D), w/b: (1, D)  -- f32 math
    mean = jnp.mean(x, axis=-1, keepdims=True)
    var = jnp.mean((x - mean) ** 2, axis=-1, keepdims=True)
    return (x - mean) * jax.lax.rsqrt(var + EPS) * w + b


# ---------------------------------------------------------------------------
# The fused decoder-layer kernel (single invocation: 2x MHA, FFN, 3x LayerNorm).
#
# vec_ref rows (all (D,)-sized f32 vectors packed on the sublane axis):
#   0 sa_bq*scale  1 sa_bk  2 sa_bv  3 ca_bq*scale  4 ca_bk  5 ca_bv
#   6 sa_out_b     7 ca_out_b  8 l2_b
#   9 n1_w  10 n1_b  11 n2_w  12 n2_b  13 n3_w  14 n3_b
# ---------------------------------------------------------------------------
def decoder_layer_kernel(tgt_ref, mem_ref, qpos_ref, pos_ref,
                         sa_wqk_ref, sa_wv_ref, sa_wo_ref,
                         ca_w_ref, ca_wo_ref,
                         l1w_ref, l1b_ref, l2w_ref,
                         vec_ref,
                         out_ref):
    B, T, D = tgt_ref.shape
    S = mem_ref.shape[1]
    H, hd = N_HEAD, HEAD_DIM
    M = B * T            # self-attn / FFN rows
    N = B * S            # cross-attn key/value rows
    f32 = jnp.float32

    def bf(x):
        return x.astype(jnp.bfloat16)

    vec = vec_ref[...]                                  # (15, D) f32
    sa_bq, sa_bk, sa_bv = vec[0:1], vec[1:2], vec[2:3]
    ca_bq, ca_bk, ca_bv = vec[3:4], vec[4:5], vec[5:6]
    sa_bo, ca_bo, l2_b = vec[6:7], vec[7:8], vec[8:9]
    n1w, n1b = vec[9:10], vec[10:11]
    n2w, n2b = vec[11:12], vec[12:13]
    n3w, n3b = vec[13:14], vec[14:15]

    tgt2 = tgt_ref[...].reshape(M, D)                   # (M, D) f32
    qpos2 = qpos_ref[...].reshape(M, D)
    mem2 = mem_ref[...].reshape(N, D)
    pos2 = pos_ref[...].reshape(N, D)

    def split_heads(x2, rows_t):
        # (B*rows_t, D) -> (H*B, rows_t, hd), head-major (n = h*B + b).
        # Static lane slices + leading-axis concat only; no data replication.
        parts = [x2[:, h * hd:(h + 1) * hd].reshape(B, rows_t, hd)
                 for h in range(H)]
        return jnp.concatenate(parts, axis=0)

    def attn_core(q2, k2, v2, Tq, Tk, wo_ref, bo):
        # q2: (B*Tq, D), k2/v2: (B*Tk, D) -> (B*Tq, D)
        qh = split_heads(q2, Tq)                        # (H*B, Tq, hd)
        kh = split_heads(k2, Tk)
        vh = split_heads(v2, Tk)
        s = jnp.einsum('nqe,nke->nqk', bf(qh), bf(kh),
                       preferred_element_type=f32)      # (H*B, Tq, Tk)
        s = s - jnp.max(s, axis=-1, keepdims=True)
        p = jnp.exp(s)
        p = p * pl.reciprocal(jnp.sum(p, axis=-1, keepdims=True), approx=True)
        ctx = jnp.einsum('nqk,nke->nqe', bf(p), bf(vh),
                         preferred_element_type=f32)    # (H*B, Tq, hd)
        # "concat heads + out_proj" == sum over heads of per-head projections.
        acc = None
        for h in range(H):
            ctx_h = ctx[h * B:(h + 1) * B].reshape(B * Tq, hd)
            part = jnp.dot(bf(ctx_h), wo_ref[h],
                           preferred_element_type=f32)  # (B*Tq, D)
            acc = part if acc is None else acc + part
        return acc + bo

    # ---- self-attention: q = k = tgt + query_pos, value = tgt --------------
    q_in = tgt2 + qpos2
    qk = jnp.dot(bf(q_in), sa_wqk_ref[...],
                 preferred_element_type=f32)            # (M, 2D), lane-dense
    q_sa = qk[:, 0:D] + sa_bq
    k_sa = qk[:, D:2 * D] + sa_bk
    v_sa = jnp.dot(bf(tgt2), sa_wv_ref[...],
                   preferred_element_type=f32) + sa_bv  # value uses raw tgt
    sa = attn_core(q_sa, k_sa, v_sa, T, T, sa_wo_ref, sa_bo)
    x = _layer_norm(tgt2 + sa, n1w, n1b)                # (M, D)

    # ---- cross-attention: q = x + query_pos, k = memory + pos, v = memory --
    q_ca = jnp.dot(bf(x + qpos2), ca_w_ref[0],
                   preferred_element_type=f32) + ca_bq  # (M, D)
    k_ca = jnp.dot(bf(mem2 + pos2), ca_w_ref[1],
                   preferred_element_type=f32) + ca_bk  # (N, D)
    v_ca = jnp.dot(bf(mem2), ca_w_ref[2],
                   preferred_element_type=f32) + ca_bv  # (N, D)
    ca = attn_core(q_ca, k_ca, v_ca, T, S, ca_wo_ref, ca_bo)
    x = _layer_norm(x + ca, n2w, n2b)

    # ---- feed-forward (relu), batch folded into rows (M = B*T) -------------
    h1 = jnp.maximum(
        jnp.dot(bf(x), l1w_ref[...], preferred_element_type=f32) + l1b_ref[...],
        0.0)
    t2 = jnp.dot(bf(h1), l2w_ref[...], preferred_element_type=f32) + l2_b
    x = _layer_norm(x + t2, n3w, n3b)

    out_ref[...] = x                                    # (B*T, D) f32

    # TODO(synk): attn_mask / key_padding_mask are Optional and None here;
    # additive masking would be a single `s + mask` before each softmax.


# ---------------------------------------------------------------------------
# Host-side weight preparation — called ONCE, outside the jitted call path.
# ---------------------------------------------------------------------------
def prepare_params(p):
    d, h, hd = D_MODEL, N_HEAD, HEAD_DIM
    scale = 1.0 / math.sqrt(hd)

    def split_qkv(w, b):
        return (w[0:d], w[d:2 * d], w[2 * d:3 * d],
                b[0:d], b[d:2 * d], b[2 * d:3 * d])

    sa_wq, sa_wk, sa_wv, sa_bq, sa_bk, sa_bv = split_qkv(p['sa_in_w'], p['sa_in_b'])
    ca_wq, ca_wk, ca_wv, ca_bq, ca_bk, ca_bv = split_qkv(p['ca_in_w'], p['ca_in_b'])

    def bfw(x):
        return x.astype(jnp.bfloat16)

    return {
        # self-attn: fused [Wq.T*scale | Wk.T] and separate Wv.T
        'sa_wqk': bfw(jnp.concatenate([sa_wq.T * scale, sa_wk.T], axis=1)),  # (D, 2D)
        'sa_wv': bfw(sa_wv.T),                                               # (D, D)
        'sa_wo': bfw(p['sa_out_w'].T.reshape(h, hd, d)),                     # (H, hd, D)
        # cross-attn: q/k/v inputs all differ -> packed on a leading axis
        'ca_w': bfw(jnp.stack([ca_wq.T * scale, ca_wk.T, ca_wv.T], axis=0)), # (3, D, D)
        'ca_wo': bfw(p['ca_out_w'].T.reshape(h, hd, d)),                     # (H, hd, D)
        'l1_wt': bfw(p['l1_w'].T),                                           # (D, FF)
        'l1_b': p['l1_b'].reshape(1, -1),                                    # (1, FF) f32
        'l2_wt': bfw(p['l2_w'].T),                                           # (FF, D)
        'vec': jnp.stack([sa_bq * scale, sa_bk, sa_bv,
                          ca_bq * scale, ca_bk, ca_bv,
                          p['sa_out_b'], p['ca_out_b'], p['l2_b'],
                          p['n1_w'], p['n1_b'], p['n2_w'], p['n2_b'],
                          p['n3_w'], p['n3_b']], axis=0),                    # (15, D) f32
    }


@jax.jit
def decoder_layer(tgt, memory, prepped, query_pos, pos):
    """tgt: (T, B, D), memory: (S, B, D) (seq-first, like PyTorch). Returns (T, B, D)."""
    T, B, D = tgt.shape
    pp = prepped

    # glue: batch-first for the kernel (only per-call XLA ops besides the kernel)
    tgt_b = jnp.transpose(tgt, (1, 0, 2))
    mem_b = jnp.transpose(memory, (1, 0, 2))
    qpos_b = jnp.transpose(query_pos, (1, 0, 2))
    pos_b = jnp.transpose(pos, (1, 0, 2))

    args = (tgt_b, mem_b, qpos_b, pos_b,
            pp['sa_wqk'], pp['sa_wv'], pp['sa_wo'],
            pp['ca_w'], pp['ca_wo'],
            pp['l1_wt'], pp['l1_b'], pp['l2_wt'],
            pp['vec'])

    def full_spec(a):
        nd = a.ndim
        return pl.BlockSpec(a.shape, lambda i, _nd=nd: (0,) * _nd)

    out = pl.pallas_call(
        decoder_layer_kernel,
        out_shape=jax.ShapeDtypeStruct((B * T, D), jnp.float32),
        grid=(1,),
        in_specs=[full_spec(a) for a in args],
        out_specs=pl.BlockSpec((B * T, D), lambda i: (0, 0)),
        compiler_params=pltpu.CompilerParams(dimension_semantics=("arbitrary",)),
    )(*args)

    return jnp.transpose(out.reshape(B, T, D), (1, 0, 2))


# ---------------------------------------------------------------------------
# Pure-JAX reference (faithful PyTorch translation, per-head loop, HIGHEST
# precision) for the correctness check.
# ---------------------------------------------------------------------------
_HI = jax.lax.Precision.HIGHEST


def _mha_ref(q_in, k_in, v_in, in_w, in_b, out_w, out_b):
    d = D_MODEL
    wq, wk, wv = in_w[0:d], in_w[d:2 * d], in_w[2 * d:3 * d]
    bq, bk, bv = in_b[0:d], in_b[d:2 * d], in_b[2 * d:3 * d]
    q = jnp.dot(q_in, wq.T, precision=_HI) + bq
    k = jnp.dot(k_in, wk.T, precision=_HI) + bk
    v = jnp.dot(v_in, wv.T, precision=_HI) + bv
    scale = 1.0 / math.sqrt(HEAD_DIM)
    heads = []
    for h_i in range(N_HEAD):
        sl = slice(h_i * HEAD_DIM, (h_i + 1) * HEAD_DIM)
        s = jnp.dot(q[:, sl] * scale, k[:, sl].T, precision=_HI)
        s = s - jnp.max(s, axis=-1, keepdims=True)
        pm = jnp.exp(s)
        pm = pm / jnp.sum(pm, axis=-1, keepdims=True)
        heads.append(jnp.dot(pm, v[:, sl], precision=_HI))
    attn = jnp.concatenate(heads, axis=-1)
    return jnp.dot(attn, out_w.T, precision=_HI) + out_b


def decoder_layer_ref(tgt, memory, params, query_pos, pos):
    p = params

    def single(t, m, qp, ps):
        q = t + qp
        t2 = _mha_ref(q, q, t, p['sa_in_w'], p['sa_in_b'], p['sa_out_w'], p['sa_out_b'])
        x = _layer_norm(t + t2, p['n1_w'][None], p['n1_b'][None])
        t2 = _mha_ref(x + qp, m + ps, m, p['ca_in_w'], p['ca_in_b'], p['ca_out_w'], p['ca_out_b'])
        x = _layer_norm(x + t2, p['n2_w'][None], p['n2_b'][None])
        h = jnp.maximum(jnp.dot(x, p['l1_w'].T, precision=_HI) + p['l1_b'], 0.0)
        t2 = jnp.dot(h, p['l2_w'].T, precision=_HI) + p['l2_b']
        return _layer_norm(x + t2, p['n3_w'][None], p['n3_b'][None])

    out_b = jax.vmap(single)(
        jnp.transpose(tgt, (1, 0, 2)), jnp.transpose(memory, (1, 0, 2)),
        jnp.transpose(query_pos, (1, 0, 2)), jnp.transpose(pos, (1, 0, 2)))
    return jnp.transpose(out_b, (1, 0, 2))


# ---------------------------------------------------------------------------
# Deterministic parameter init (shapes follow the module's __init__).
# ---------------------------------------------------------------------------
def init_params(key):
    ks = jax.random.split(key, 12)
    scale = 0.1

    def w(k, shape):
        return scale * jax.random.normal(k, shape, dtype=jnp.float32)

    return {
        'sa_in_w': w(ks[0], (3 * D_MODEL, D_MODEL)),
        'sa_in_b': w(ks[1], (3 * D_MODEL,)),
        'sa_out_w': w(ks[2], (D_MODEL, D_MODEL)),
        'sa_out_b': w(ks[3], (D_MODEL,)),
        'ca_in_w': w(ks[4], (3 * D_MODEL, D_MODEL)),
        'ca_in_b': w(ks[5], (3 * D_MODEL,)),
        'ca_out_w': w(ks[6], (D_MODEL, D_MODEL)),
        'ca_out_b': w(ks[7], (D_MODEL,)),
        'l1_w': w(ks[8], (DIM_FF, D_MODEL)),
        'l1_b': w(ks[9], (DIM_FF,)),
        'l2_w': w(ks[10], (D_MODEL, DIM_FF)),
        'l2_b': w(ks[11], (D_MODEL,)),
        'n1_w': jnp.ones((D_MODEL,), jnp.float32),
        'n1_b': jnp.zeros((D_MODEL,), jnp.float32),
        'n2_w': jnp.ones((D_MODEL,), jnp.float32),
        'n2_b': jnp.zeros((D_MODEL,), jnp.float32),
        'n3_w': jnp.ones((D_MODEL,), jnp.float32),
        'n3_b': jnp.zeros((D_MODEL,), jnp.float32),
    }


if __name__ == "__main__":
    key = jax.random.PRNGKey(0)
    k_par, k_tgt, k_mem, k_qp, k_pos = jax.random.split(key, 5)

    T, S, B = 8, 16, 2          # tgt seq len, memory seq len, batch
    params = init_params(k_par)

    # Weight packing / transposes / bf16 casts happen ONCE, outside the jit.
    prepped = prepare_params(params)

    tgt = jax.random.normal(k_tgt, (T, B, D_MODEL), dtype=jnp.float32)
    memory = jax.random.normal(k_mem, (S, B, D_MODEL), dtype=jnp.float32)
    query_pos = jax.random.normal(k_qp, (T, B, D_MODEL), dtype=jnp.float32)
    pos = jax.random.normal(k_pos, (S, B, D_MODEL), dtype=jnp.float32)

    out = jax.block_until_ready(decoder_layer(tgt, memory, prepped, query_pos, pos))
    ref = jax.block_until_ready(decoder_layer_ref(tgt, memory, params, query_pos, pos))

    assert out.shape == (T, B, D_MODEL)
    # 2e-2 tolerance: the kernel runs bf16 matmuls (f32 accumulation) plus an
    # approx reciprocal in softmax; the reference runs f32 HIGHEST. Structural
    # bugs show up as O(0.1+).
    assert jnp.allclose(out, ref, atol=2e-2, rtol=2e-2), float(jnp.max(jnp.abs(out - ref)))

    print("KERNEL_OK")
</pallas_src>

<mosaic_0001>
module attributes {stable_mosaic.version = 11 : i64} {
  func.func @decoder_layer_kernel(%arg0: i32, %arg1: memref<2x8x32xf32, #tpu.memory_space<vmem>>, %arg2: memref<2x16x32xf32, #tpu.memory_space<vmem>>, %arg3: memref<2x8x32xf32, #tpu.memory_space<vmem>>, %arg4: memref<2x16x32xf32, #tpu.memory_space<vmem>>, %arg5: memref<32x64xbf16, #tpu.memory_space<vmem>>, %arg6: memref<32x32xbf16, #tpu.memory_space<vmem>>, %arg7: memref<4x8x32xbf16, #tpu.memory_space<vmem>>, %arg8: memref<3x32x32xbf16, #tpu.memory_space<vmem>>, %arg9: memref<4x8x32xbf16, #tpu.memory_space<vmem>>, %arg10: memref<32x64xbf16, #tpu.memory_space<vmem>>, %arg11: memref<1x64xf32, #tpu.memory_space<vmem>>, %arg12: memref<64x32xbf16, #tpu.memory_space<vmem>>, %arg13: memref<15x32xf32, #tpu.memory_space<vmem>>, %arg14: memref<16x32xf32, #tpu.memory_space<vmem>>) attributes {dimension_semantics = [#tpu.dimension_semantics<arbitrary>], iteration_bounds = array<i64: 1>, scalar_prefetch = 0 : i64, scratch_operands = 0 : i64, tpu.core_type = #tpu.core_type<tc>, window_params = [{pipeline_mode = #tpu.pipeline_mode<synchronous>, transform_indices = @transform_0, window_bounds = array<i64: 2, 8, 32>}, {pipeline_mode = #tpu.pipeline_mode<synchronous>, transform_indices = @transform_1, window_bounds = array<i64: 2, 16, 32>}, {pipeline_mode = #tpu.pipeline_mode<synchronous>, transform_indices = @transform_2, window_bounds = array<i64: 2, 8, 32>}, {pipeline_mode = #tpu.pipeline_mode<synchronous>, transform_indices = @transform_3, window_bounds = array<i64: 2, 16, 32>}, {pipeline_mode = #tpu.pipeline_mode<synchronous>, transform_indices = @transform_4, window_bounds = array<i64: 32, 64>}, {pipeline_mode = #tpu.pipeline_mode<synchronous>, transform_indices = @transform_5, window_bounds = array<i64: 32, 32>}, {pipeline_mode = #tpu.pipeline_mode<synchronous>, transform_indices = @transform_6, window_bounds = array<i64: 4, 8, 32>}, {pipeline_mode = #tpu.pipeline_mode<synchronous>, transform_indices = @transform_7, window_bounds = array<i64: 3, 32, 32>}, {pipeline_mode = #tpu.pipeline_mode<synchronous>, transform_indices = @transform_8, window_bounds = array<i64: 4, 8, 32>}, {pipeline_mode = #tpu.pipeline_mode<synchronous>, transform_indices = @transform_9, window_bounds = array<i64: 32, 64>}, {pipeline_mode = #tpu.pipeline_mode<synchronous>, transform_indices = @transform_10, window_bounds = array<i64: 1, 64>}, {pipeline_mode = #tpu.pipeline_mode<synchronous>, transform_indices = @transform_11, window_bounds = array<i64: 64, 32>}, {pipeline_mode = #tpu.pipeline_mode<synchronous>, transform_indices = @transform_12, window_bounds = array<i64: 15, 32>}, {pipeline_mode = #tpu.pipeline_mode<synchronous>, transform_indices = @transform_13, window_bounds = array<i64: 16, 32>}]} {
    %c0 = arith.constant 0 : index
    %c0_0 = arith.constant 0 : index
    %0 = vector.load %arg13[%c0, %c0_0] : memref<15x32xf32, #tpu.memory_space<vmem>>, vector<15x32xf32>
    %1 = vector.extract_strided_slice %0 {offsets = [0, 0], sizes = [1, 32], strides = [1, 1]} : vector<15x32xf32> to vector<1x32xf32>
    %2 = vector.extract_strided_slice %0 {offsets = [1, 0], sizes = [1, 32], strides = [1, 1]} : vector<15x32xf32> to vector<1x32xf32>
    %3 = vector.extract_strided_slice %0 {offsets = [2, 0], sizes = [1, 32], strides = [1, 1]} : vector<15x32xf32> to vector<1x32xf32>
    %4 = vector.extract_strided_slice %0 {offsets = [3, 0], sizes = [1, 32], strides = [1, 1]} : vector<15x32xf32> to vector<1x32xf32>
    %5 = vector.extract_strided_slice %0 {offsets = [4, 0], sizes = [1, 32], strides = [1, 1]} : vector<15x32xf32> to vector<1x32xf32>
    %6 = vector.extract_strided_slice %0 {offsets = [5, 0], sizes = [1, 32], strides = [1, 1]} : vector<15x32xf32> to vector<1x32xf32>
    %7 = vector.extract_strided_slice %0 {offsets = [6, 0], sizes = [1, 32], strides = [1, 1]} : vector<15x32xf32> to vector<1x32xf32>
    %8 = vector.extract_strided_slice %0 {offsets = [7, 0], sizes = [1, 32], strides = [1, 1]} : vector<15x32xf32> to vector<1x32xf32>
    %9 = vector.extract_strided_slice %0 {offsets = [8, 0], sizes = [1, 32], strides = [1, 1]} : vector<15x32xf32> to vector<1x32xf32>
    %10 = vector.extract_strided_slice %0 {offsets = [9, 0], sizes = [1, 32], strides = [1, 1]} : vector<15x32xf32> to vector<1x32xf32>
    %11 = vector.extract_strided_slice %0 {offsets = [10, 0], sizes = [1, 32], strides = [1, 1]} : vector<15x32xf32> to vector<1x32xf32>
    %12 = vector.extract_strided_slice %0 {offsets = [11, 0], sizes = [1, 32], strides = [1, 1]} : vector<15x32xf32> to vector<1x32xf32>
    %13 = vector.extract_strided_slice %0 {offsets = [12, 0], sizes = [1, 32], strides = [1, 1]} : vector<15x32xf32> to vector<1x32xf32>
    %14 = vector.extract_strided_slice %0 {offsets = [13, 0], sizes = [1, 32], strides = [1, 1]} : vector<15x32xf32> to vector<1x32xf32>
    %15 = vector.extract_strided_slice %0 {offsets = [14, 0], sizes = [1, 32], strides = [1, 1]} : vector<15x32xf32> to vector<1x32xf32>
    %c0_1 = arith.constant 0 : index
    %c0_2 = arith.constant 0 : index
    %c0_3 = arith.constant 0 : index
    %16 = vector.load %arg1[%c0_1, %c0_2, %c0_3] : memref<2x8x32xf32, #tpu.memory_space<vmem>>, vector<2x8x32xf32>
    %17 = vector.shape_cast %16 : vector<2x8x32xf32> to vector<16x32xf32>
    %c0_4 = arith.constant 0 : index
    %c0_5 = arith.constant 0 : index
    %c0_6 = arith.constant 0 : index
    %18 = vector.load %arg3[%c0_4, %c0_5, %c0_6] : memref<2x8x32xf32, #tpu.memory_space<vmem>>, vector<2x8x32xf32>
    %19 = vector.shape_cast %18 : vector<2x8x32xf32> to vector<16x32xf32>
    %c0_7 = arith.constant 0 : index
    %c0_8 = arith.constant 0 : index
    %c0_9 = arith.constant 0 : index
    %20 = vector.load %arg2[%c0_7, %c0_8, %c0_9] : memref<2x16x32xf32, #tpu.memory_space<vmem>>, vector<2x16x32xf32>
    %21 = vector.shape_cast %20 : vector<2x16x32xf32> to vector<32x32xf32>
    %c0_10 = arith.constant 0 : index
    %c0_11 = arith.constant 0 : index
    %c0_12 = arith.constant 0 : index
    %22 = vector.load %arg4[%c0_10, %c0_11, %c0_12] : memref<2x16x32xf32, #tpu.memory_space<vmem>>, vector<2x16x32xf32>
    %23 = vector.shape_cast %22 : vector<2x16x32xf32> to vector<32x32xf32>
    %24 = arith.addf %17, %19 : vector<16x32xf32>
    %25 = arith.truncf %24 : vector<16x32xf32> to vector<16x32xbf16>
    %c0_13 = arith.constant 0 : index
    %c0_14 = arith.constant 0 : index
    %26 = vector.load %arg5[%c0_13, %c0_14] : memref<32x64xbf16, #tpu.memory_space<vmem>>, vector<32x64xbf16>
    %cst = arith.constant dense<0.000000e+00> : vector<16x64xf32>
    %27 = tpu.matmul %25, %26, %cst {dimension_numbers = #tpu.dot_dimension_numbers<[1], [0], [0], [1], [0, 0, 1, 1], [], []>} : vector<16x32xbf16>, vector<32x64xbf16>, vector<16x64xf32> -> vector<16x64xf32>
    %28 = vector.extract_strided_slice %27 {offsets = [0, 0], sizes = [16, 32], strides = [1, 1]} : vector<16x64xf32> to vector<16x32xf32>
    %29 = vector.broadcast %1 : vector<1x32xf32> to vector<16x32xf32>
    %30 = arith.addf %28, %29 : vector<16x32xf32>
    %31 = vector.extract_strided_slice %27 {offsets = [0, 32], sizes = [16, 32], strides = [1, 1]} : vector<16x64xf32> to vector<16x32xf32>
    %32 = vector.broadcast %2 : vector<1x32xf32> to vector<16x32xf32>
    %33 = arith.addf %31, %32 : vector<16x32xf32>
    %34 = arith.truncf %17 : vector<16x32xf32> to vector<16x32xbf16>
    %c0_15 = arith.constant 0 : index
    %c0_16 = arith.constant 0 : index
    %35 = vector.load %arg6[%c0_15, %c0_16] : memref<32x32xbf16, #tpu.memory_space<vmem>>, vector<32x32xbf16>
    %cst_17 = arith.constant dense<0.000000e+00> : vector<16x32xf32>
    %36 = tpu.matmul %34, %35, %cst_17 {dimension_numbers = #tpu.dot_dimension_numbers<[1], [0], [0], [1], [0, 0, 1, 1], [], []>} : vector<16x32xbf16>, vector<32x32xbf16>, vector<16x32xf32> -> vector<16x32xf32>
    %37 = vector.broadcast %3 : vector<1x32xf32> to vector<16x32xf32>
    %38 = arith.addf %36, %37 : vector<16x32xf32>
    %39 = vector.extract_strided_slice %30 {offsets = [0, 0], sizes = [16, 8], strides = [1, 1]} : vector<16x32xf32> to vector<16x8xf32>
    %40 = vector.shape_cast %39 : vector<16x8xf32> to vector<2x8x8xf32>
    %41 = vector.extract_strided_slice %30 {offsets = [0, 8], sizes = [16, 8], strides = [1, 1]} : vector<16x32xf32> to vector<16x8xf32>
    %42 = vector.shape_cast %41 : vector<16x8xf32> to vector<2x8x8xf32>
    %43 = vector.extract_strided_slice %30 {offsets = [0, 16], sizes = [16, 8], strides = [1, 1]} : vector<16x32xf32> to vector<16x8xf32>
    %44 = vector.shape_cast %43 : vector<16x8xf32> to vector<2x8x8xf32>
    %45 = vector.extract_strided_slice %30 {offsets = [0, 24], sizes = [16, 8], strides = [1, 1]} : vector<16x32xf32> to vector<16x8xf32>
    %46 = vector.shape_cast %45 : vector<16x8xf32> to vector<2x8x8xf32>
    %47 = tpu.concatenate %40, %42, %44, %46 in 0 : vector<2x8x8xf32>, vector<2x8x8xf32>, vector<2x8x8xf32>, vector<2x8x8xf32> -> vector<8x8x8xf32>
    %48 = vector.extract_strided_slice %33 {offsets = [0, 0], sizes = [16, 8], strides = [1, 1]} : vector<16x32xf32> to vector<16x8xf32>
    %49 = vector.shape_cast %48 : vector<16x8xf32> to vector<2x8x8xf32>
    %50 = vector.extract_strided_slice %33 {offsets = [0, 8], sizes = [16, 8], strides = [1, 1]} : vector<16x32xf32> to vector<16x8xf32>
    %51 = vector.shape_cast %50 : vector<16x8xf32> to vector<2x8x8xf32>
    %52 = vector.extract_strided_slice %33 {offsets = [0, 16], sizes = [16, 8], strides = [1, 1]} : vector<16x32xf32> to vector<16x8xf32>
    %53 = vector.shape_cast %52 : vector<16x8xf32> to vector<2x8x8xf32>
    %54 = vector.extract_strided_slice %33 {offsets = [0, 24], sizes = [16, 8], strides = [1, 1]} : vector<16x32xf32> to vector<16x8xf32>
    %55 = vector.shape_cast %54 : vector<16x8xf32> to vector<2x8x8xf32>
    %56 = tpu.concatenate %49, %51, %53, %55 in 0 : vector<2x8x8xf32>, vector<2x8x8xf32>, vector<2x8x8xf32>, vector<2x8x8xf32> -> vector<8x8x8xf32>
    %57 = vector.extract_strided_slice %38 {offsets = [0, 0], sizes = [16, 8], strides = [1, 1]} : vector<16x32xf32> to vector<16x8xf32>
    %58 = vector.shape_cast %57 : vector<16x8xf32> to vector<2x8x8xf32>
    %59 = vector.extract_strided_slice %38 {offsets = [0, 8], sizes = [16, 8], strides = [1, 1]} : vector<16x32xf32> to vector<16x8xf32>
    %60 = vector.shape_cast %59 : vector<16x8xf32> to vector<2x8x8xf32>
    %61 = vector.extract_strided_slice %38 {offsets = [0, 16], sizes = [16, 8], strides = [1, 1]} : vector<16x32xf32> to vector<16x8xf32>
    %62 = vector.shape_cast %61 : vector<16x8xf32> to vector<2x8x8xf32>
    %63 = vector.extract_strided_slice %38 {offsets = [0, 24], sizes = [16, 8], strides = [1, 1]} : vector<16x32xf32> to vector<16x8xf32>
    %64 = vector.shape_cast %63 : vector<16x8xf32> to vector<2x8x8xf32>
    %65 = tpu.concatenate %58, %60, %62, %64 in 0 : vector<2x8x8xf32>, vector<2x8x8xf32>, vector<2x8x8xf32>, vector<2x8x8xf32> -> vector<8x8x8xf32>
    %66 = arith.truncf %47 : vector<8x8x8xf32> to vector<8x8x8xbf16>
    %67 = arith.truncf %56 : vector<8x8x8xf32> to vector<8x8x8xbf16>
    "tpu.trace_start"() <{level = 10 : i32, message = "nqe,nke->nqk"}> : () -> ()
    %cst_18 = arith.constant dense<0.000000e+00> : vector<8x8x8xf32>
    %68 = tpu.matmul %66, %67, %cst_18 {dimension_numbers = #tpu.dot_dimension_numbers<[2], [2], [1], [1], [0, 0, 0, 1, 1, 1], [0], [0]>} : vector<8x8x8xbf16>, vector<8x8x8xbf16>, vector<8x8x8xf32> -> vector<8x8x8xf32>
    "tpu.trace_stop"() : () -> ()
    %cst_19 = arith.constant dense<0xFF800000> : vector<8x8xf32>
    %69 = vector.multi_reduction <maximumf>, %68, %cst_19 [2] : vector<8x8x8xf32> to vector<8x8xf32>
    %70 = vector.shape_cast %69 : vector<8x8xf32> to vector<8x8x1xf32>
    %71 = vector.broadcast %70 : vector<8x8x1xf32> to vector<8x8x8xf32>
    %72 = arith.subf %68, %71 : vector<8x8x8xf32>
    %73 = math.exp %72 : vector<8x8x8xf32>
    %cst_20 = arith.constant dense<0.000000e+00> : vector<8x8xf32>
    %74 = vector.multi_reduction <add>, %73, %cst_20 [2] : vector<8x8x8xf32> to vector<8x8xf32>
    %75 = vector.shape_cast %74 : vector<8x8xf32> to vector<8x8x1xf32>
    %76 = tpu.reciprocal %75 {approx = true} : vector<8x8x1xf32> -> vector<8x8x1xf32>
    %77 = vector.broadcast %76 : vector<8x8x1xf32> to vector<8x8x8xf32>
    %78 = arith.mulf %73, %77 : vector<8x8x8xf32>
    %79 = arith.truncf %78 : vector<8x8x8xf32> to vector<8x8x8xbf16>
    %80 = arith.truncf %65 : vector<8x8x8xf32> to vector<8x8x8xbf16>
    "tpu.trace_start"() <{level = 10 : i32, message = "nqk,nke->nqe"}> : () -> ()
    %cst_21 = arith.constant dense<0.000000e+00> : vector<8x8x8xf32>
    %81 = tpu.matmul %79, %80, %cst_21 {dimension_numbers = #tpu.dot_dimension_numbers<[2], [1], [1], [2], [0, 0, 0, 1, 1, 2], [0], [0]>} : vector<8x8x8xbf16>, vector<8x8x8xbf16>, vector<8x8x8xf32> -> vector<8x8x8xf32>
    "tpu.trace_stop"() : () -> ()
    %82 = vector.extract_strided_slice %81 {offsets = [0, 0, 0], sizes = [2, 8, 8], strides = [1, 1, 1]} : vector<8x8x8xf32> to vector<2x8x8xf32>
    %83 = vector.shape_cast %82 : vector<2x8x8xf32> to vector<16x8xf32>
    %84 = arith.truncf %83 : vector<16x8xf32> to vector<16x8xbf16>
    %c0_22 = arith.constant 0 : index
    %c0_23 = arith.constant 0 : index
    %c0_24 = arith.constant 0 : index
    %85 = vector.load %arg7[%c0_22, %c0_23, %c0_24] : memref<4x8x32xbf16, #tpu.memory_space<vmem>>, vector<1x8x32xbf16>
    %86 = vector.shape_cast %85 : vector<1x8x32xbf16> to vector<8x32xbf16>
    %cst_25 = arith.constant dense<0.000000e+00> : vector<16x32xf32>
    %87 = tpu.matmul %84, %86, %cst_25 {dimension_numbers = #tpu.dot_dimension_numbers<[1], [0], [0], [1], [0, 0, 1, 1], [], []>} : vector<16x8xbf16>, vector<8x32xbf16>, vector<16x32xf32> -> vector<16x32xf32>
    %88 = vector.extract_strided_slice %81 {offsets = [2, 0, 0], sizes = [2, 8, 8], strides = [1, 1, 1]} : vector<8x8x8xf32> to vector<2x8x8xf32>
    %89 = vector.shape_cast %88 : vector<2x8x8xf32> to vector<16x8xf32>
    %90 = arith.truncf %89 : vector<16x8xf32> to vector<16x8xbf16>
    %c1 = arith.constant 1 : index
    %c0_26 = arith.constant 0 : index
    %c0_27 = arith.constant 0 : index
    %91 = vector.load %arg7[%c1, %c0_26, %c0_27] : memref<4x8x32xbf16, #tpu.memory_space<vmem>>, vector<1x8x32xbf16>
    %92 = vector.shape_cast %91 : vector<1x8x32xbf16> to vector<8x32xbf16>
    %cst_28 = arith.constant dense<0.000000e+00> : vector<16x32xf32>
    %93 = tpu.matmul %90, %92, %cst_28 {dimension_numbers = #tpu.dot_dimension_numbers<[1], [0], [0], [1], [0, 0, 1, 1], [], []>} : vector<16x8xbf16>, vector<8x32xbf16>, vector<16x32xf32> -> vector<16x32xf32>
    %94 = arith.addf %87, %93 : vector<16x32xf32>
    %95 = vector.extract_strided_slice %81 {offsets = [4, 0, 0], sizes = [2, 8, 8], strides = [1, 1, 1]} : vector<8x8x8xf32> to vector<2x8x8xf32>
    %96 = vector.shape_cast %95 : vector<2x8x8xf32> to vector<16x8xf32>
    %97 = arith.truncf %96 : vector<16x8xf32> to vector<16x8xbf16>
    %c2 = arith.constant 2 : index
    %c0_29 = arith.constant 0 : index
    %c0_30 = arith.constant 0 : index
    %98 = vector.load %arg7[%c2, %c0_29, %c0_30] : memref<4x8x32xbf16, #tpu.memory_space<vmem>>, vector<1x8x32xbf16>
    %99 = vector.shape_cast %98 : vector<1x8x32xbf16> to vector<8x32xbf16>
    %cst_31 = arith.constant dense<0.000000e+00> : vector<16x32xf32>
    %100 = tpu.matmul %97, %99, %cst_31 {dimension_numbers = #tpu.dot_dimension_numbers<[1], [0], [0], [1], [0, 0, 1, 1], [], []>} : vector<16x8xbf16>, vector<8x32xbf16>, vector<16x32xf32> -> vector<16x32xf32>
    %101 = arith.addf %94, %100 : vector<16x32xf32>
    %102 = vector.extract_strided_slice %81 {offsets = [6, 0, 0], sizes = [2, 8, 8], strides = [1, 1, 1]} : vector<8x8x8xf32> to vector<2x8x8xf32>
    %103 = vector.shape_cast %102 : vector<2x8x8xf32> to vector<16x8xf32>
    %104 = arith.truncf %103 : vector<16x8xf32> to vector<16x8xbf16>
    %c3 = arith.constant 3 : index
    %c0_32 = arith.constant 0 : index
    %c0_33 = arith.constant 0 : index
    %105 = vector.load %arg7[%c3, %c0_32, %c0_33] : memref<4x8x32xbf16, #tpu.memory_space<vmem>>, vector<1x8x32xbf16>
    %106 = vector.shape_cast %105 : vector<1x8x32xbf16> to vector<8x32xbf16>
    %cst_34 = arith.constant dense<0.000000e+00> : vector<16x32xf32>
    %107 = tpu.matmul %104, %106, %cst_34 {dimension_numbers = #tpu.dot_dimension_numbers<[1], [0], [0], [1], [0, 0, 1, 1], [], []>} : vector<16x8xbf16>, vector<8x32xbf16>, vector<16x32xf32> -> vector<16x32xf32>
    %108 = arith.addf %101, %107 : vector<16x32xf32>
    %109 = vector.broadcast %7 : vector<1x32xf32> to vector<16x32xf32>
    %110 = arith.addf %108, %109 : vector<16x32xf32>
    %111 = arith.addf %17, %110 : vector<16x32xf32>
    %cst_35 = arith.constant dense<0.000000e+00> : vector<16xf32>
    %112 = vector.multi_reduction <add>, %111, %cst_35 [1] : vector<16x32xf32> to vector<16xf32>
    %113 = vector.shape_cast %112 : vector<16xf32> to vector<16x1xf32>
    %cst_36 = arith.constant 3.200000e+01 : f32
    %114 = vector.broadcast %cst_36 : f32 to vector<16x1xf32>
    %115 = arith.divf %113, %114 : vector<16x1xf32>
    %116 = vector.broadcast %115 : vector<16x1xf32> to vector<16x32xf32>
    %117 = arith.subf %111, %116 : vector<16x32xf32>
    %118 = arith.mulf %117, %117 : vector<16x32xf32>
    %cst_37 = arith.constant dense<0.000000e+00> : vector<16xf32>
    %119 = vector.multi_reduction <add>, %118, %cst_37 [1] : vector<16x32xf32> to vector<16xf32>
    %120 = vector.shape_cast %119 : vector<16xf32> to vector<16x1xf32>
    %cst_38 = arith.constant 3.200000e+01 : f32
    %121 = vector.broadcast %cst_38 : f32 to vector<16x1xf32>
    %122 = arith.divf %120, %121 : vector<16x1xf32>
    %123 = vector.broadcast %115 : vector<16x1xf32> to vector<16x32xf32>
    %124 = arith.subf %111, %123 : vector<16x32xf32>
    %cst_39 = arith.constant 9.99999974E-6 : f32
    %125 = vector.broadcast %cst_39 : f32 to vector<16x1xf32>
    %126 = arith.addf %122, %125 : vector<16x1xf32>
    %127 = math.rsqrt %126 : vector<16x1xf32>
    %128 = vector.broadcast %127 : vector<16x1xf32> to vector<16x32xf32>
    %129 = arith.mulf %124, %128 : vector<16x32xf32>
    %130 = vector.broadcast %10 : vector<1x32xf32> to vector<16x32xf32>
    %131 = arith.mulf %129, %130 : vector<16x32xf32>
    %132 = vector.broadcast %11 : vector<1x32xf32> to vector<16x32xf32>
    %133 = arith.addf %131, %132 : vector<16x32xf32>
    %134 = arith.addf %133, %19 : vector<16x32xf32>
    %135 = arith.truncf %134 : vector<16x32xf32> to vector<16x32xbf16>
    %c0_40 = arith.constant 0 : index
    %c0_41 = arith.constant 0 : index
    %c0_42 = arith.constant 0 : index
    %136 = vector.load %arg8[%c0_40, %c0_41, %c0_42] : memref<3x32x32xbf16, #tpu.memory_space<vmem>>, vector<1x32x32xbf16>
    %137 = vector.shape_cast %136 : vector<1x32x32xbf16> to vector<32x32xbf16>
    %cst_43 = arith.constant dense<0.000000e+00> : vector<16x32xf32>
    %138 = tpu.matmul %135, %137, %cst_43 {dimension_numbers = #tpu.dot_dimension_numbers<[1], [0], [0], [1], [0, 0, 1, 1], [], []>} : vector<16x32xbf16>, vector<32x32xbf16>, vector<16x32xf32> -> vector<16x32xf32>
    %139 = vector.broadcast %4 : vector<1x32xf32> to vector<16x32xf32>
    %140 = arith.addf %138, %139 : vector<16x32xf32>
    %141 = arith.addf %21, %23 : vector<32x32xf32>
    %142 = arith.truncf %141 : vector<32x32xf32> to vector<32x32xbf16>
    %c1_44 = arith.constant 1 : index
    %c0_45 = arith.constant 0 : index
    %c0_46 = arith.constant 0 : index
    %143 = vector.load %arg8[%c1_44, %c0_45, %c0_46] : memref<3x32x32xbf16, #tpu.memory_space<vmem>>, vector<1x32x32xbf16>
    %144 = vector.shape_cast %143 : vector<1x32x32xbf16> to vector<32x32xbf16>
    %cst_47 = arith.constant dense<0.000000e+00> : vector<32x32xf32>
    %145 = tpu.matmul %142, %144, %cst_47 {dimension_numbers = #tpu.dot_dimension_numbers<[1], [0], [0], [1], [0, 0, 1, 1], [], []>} : vector<32x32xbf16>, vector<32x32xbf16>, vector<32x32xf32> -> vector<32x32xf32>
    %146 = vector.broadcast %5 : vector<1x32xf32> to vector<32x32xf32>
    %147 = arith.addf %145, %146 : vector<32x32xf32>
    %148 = arith.truncf %21 : vector<32x32xf32> to vector<32x32xbf16>
    %c2_48 = arith.constant 2 : index
    %c0_49 = arith.constant 0 : index
    %c0_50 = arith.constant 0 : index
    %149 = vector.load %arg8[%c2_48, %c0_49, %c0_50] : memref<3x32x32xbf16, #tpu.memory_space<vmem>>, vector<1x32x32xbf16>
    %150 = vector.shape_cast %149 : vector<1x32x32xbf16> to vector<32x32xbf16>
    %cst_51 = arith.constant dense<0.000000e+00> : vector<32x32xf32>
    %151 = tpu.matmul %148, %150, %cst_51 {dimension_numbers = #tpu.dot_dimension_numbers<[1], [0], [0], [1], [0, 0, 1, 1], [], []>} : vector<32x32xbf16>, vector<32x32xbf16>, vector<32x32xf32> -> vector<32x32xf32>
    %152 = vector.broadcast %6 : vector<1x32xf32> to vector<32x32xf32>
    %153 = arith.addf %151, %152 : vector<32x32xf32>
    %154 = vector.extract_strided_slice %140 {offsets = [0, 0], sizes = [16, 8], strides = [1, 1]} : vector<16x32xf32> to vector<16x8xf32>
    %155 = vector.shape_cast %154 : vector<16x8xf32> to vector<2x8x8xf32>
    %156 = vector.extract_strided_slice %140 {offsets = [0, 8], sizes = [16, 8], strides = [1, 1]} : vector<16x32xf32> to vector<16x8xf32>
    %157 = vector.shape_cast %156 : vector<16x8xf32> to vector<2x8x8xf32>
    %158 = vector.extract_strided_slice %140 {offsets = [0, 16], sizes = [16, 8], strides = [1, 1]} : vector<16x32xf32> to vector<16x8xf32>
    %159 = vector.shape_cast %158 : vector<16x8xf32> to vector<2x8x8xf32>
    %160 = vector.extract_strided_slice %140 {offsets = [0, 24], sizes = [16, 8], strides = [1, 1]} : vector<16x32xf32> to vector<16x8xf32>
    %161 = vector.shape_cast %160 : vector<16x8xf32> to vector<2x8x8xf32>
    %162 = tpu.concatenate %155, %157, %159, %161 in 0 : vector<2x8x8xf32>, vector<2x8x8xf32>, vector<2x8x8xf32>, vector<2x8x8xf32> -> vector<8x8x8xf32>
    %163 = vector.extract_strided_slice %147 {offsets = [0, 0], sizes = [32, 8], strides = [1, 1]} : vector<32x32xf32> to vector<32x8xf32>
    %164 = vector.shape_cast %163 : vector<32x8xf32> to vector<2x16x8xf32>
    %165 = vector.extract_strided_slice %147 {offsets = [0, 8], sizes = [32, 8], strides = [1, 1]} : vector<32x32xf32> to vector<32x8xf32>
    %166 = vector.shape_cast %165 : vector<32x8xf32> to vector<2x16x8xf32>
    %167 = vector.extract_strided_slice %147 {offsets = [0, 16], sizes = [32, 8], strides = [1, 1]} : vector<32x32xf32> to vector<32x8xf32>
    %168 = vector.shape_cast %167 : vector<32x8xf32> to vector<2x16x8xf32>
    %169 = vector.extract_strided_slice %147 {offsets = [0, 24], sizes = [32, 8], strides = [1, 1]} : vector<32x32xf32> to vector<32x8xf32>
    %170 = vector.shape_cast %169 : vector<32x8xf32> to vector<2x16x8xf32>
    %171 = tpu.concatenate %164, %166, %168, %170 in 0 : vector<2x16x8xf32>, vector<2x16x8xf32>, vector<2x16x8xf32>, vector<2x16x8xf32> -> vector<8x16x8xf32>
    %172 = vector.extract_strided_slice %153 {offsets = [0, 0], sizes = [32, 8], strides = [1, 1]} : vector<32x32xf32> to vector<32x8xf32>
    %173 = vector.shape_cast %172 : vector<32x8xf32> to vector<2x16x8xf32>
    %174 = vector.extract_strided_slice %153 {offsets = [0, 8], sizes = [32, 8], strides = [1, 1]} : vector<32x32xf32> to vector<32x8xf32>
    %175 = vector.shape_cast %174 : vector<32x8xf32> to vector<2x16x8xf32>
    %176 = vector.extract_strided_slice %153 {offsets = [0, 16], sizes = [32, 8], strides = [1, 1]} : vector<32x32xf32> to vector<32x8xf32>
    %177 = vector.shape_cast %176 : vector<32x8xf32> to vector<2x16x8xf32>
    %178 = vector.extract_strided_slice %153 {offsets = [0, 24], sizes = [32, 8], strides = [1, 1]} : vector<32x32xf32> to vector<32x8xf32>
    %179 = vector.shape_cast %178 : vector<32x8xf32> to vector<2x16x8xf32>
    %180 = tpu.concatenate %173, %175, %177, %179 in 0 : vector<2x16x8xf32>, vector<2x16x8xf32>, vector<2x16x8xf32>, vector<2x16x8xf32> -> vector<8x16x8xf32>
    %181 = arith.truncf %162 : vector<8x8x8xf32> to vector<8x8x8xbf16>
    %182 = arith.truncf %171 : vector<8x16x8xf32> to vector<8x16x8xbf16>
    "tpu.trace_start"() <{level = 10 : i32, message = "nqe,nke->nqk"}> : () -> ()
    %cst_52 = arith.constant dense<0.000000e+00> : vector<8x8x16xf32>
    %183 = tpu.matmul %181, %182, %cst_52 {dimension_numbers = #tpu.dot_dimension_numbers<[2], [2], [1], [1], [0, 0, 0, 1, 1, 1], [0], [0]>} : vector<8x8x8xbf16>, vector<8x16x8xbf16>, vector<8x8x16xf32> -> vector<8x8x16xf32>
    "tpu.trace_stop"() : () -> ()
    %cst_53 = arith.constant dense<0xFF800000> : vector<8x8xf32>
    %184 = vector.multi_reduction <maximumf>, %183, %cst_53 [2] : vector<8x8x16xf32> to vector<8x8xf32>
    %185 = vector.shape_cast %184 : vector<8x8xf32> to vector<8x8x1xf32>
    %186 = vector.broadcast %185 : vector<8x8x1xf32> to vector<8x8x16xf32>
    %187 = arith.subf %183, %186 : vector<8x8x16xf32>
    %188 = math.exp %187 : vector<8x8x16xf32>
    %cst_54 = arith.constant dense<0.000000e+00> : vector<8x8xf32>
    %189 = vector.multi_reduction <add>, %188, %cst_54 [2] : vector<8x8x16xf32> to vector<8x8xf32>
    %190 = vector.shape_cast %189 : vector<8x8xf32> to vector<8x8x1xf32>
    %191 = tpu.reciprocal %190 {approx = true} : vector<8x8x1xf32> -> vector<8x8x1xf32>
    %192 = vector.broadcast %191 : vector<8x8x1xf32> to vector<8x8x16xf32>
    %193 = arith.mulf %188, %192 : vector<8x8x16xf32>
    %194 = arith.truncf %193 : vector<8x8x16xf32> to vector<8x8x16xbf16>
    %195 = arith.truncf %180 : vector<8x16x8xf32> to vector<8x16x8xbf16>
    "tpu.trace_start"() <{level = 10 : i32, message = "nqk,nke->nqe"}> : () -> ()
    %cst_55 = arith.constant dense<0.000000e+00> : vector<8x8x8xf32>
    %196 = tpu.matmul %194, %195, %cst_55 {dimension_numbers = #tpu.dot_dimension_numbers<[2], [1], [1], [2], [0, 0, 0, 1, 1, 2], [0], [0]>} : vector<8x8x16xbf16>, vector<8x16x8xbf16>, vector<8x8x8xf32> -> vector<8x8x8xf32>
    "tpu.trace_stop"() : () -> ()
    %197 = vector.extract_strided_slice %196 {offsets = [0, 0, 0], sizes = [2, 8, 8], strides = [1, 1, 1]} : vector<8x8x8xf32> to vector<2x8x8xf32>
    %198 = vector.shape_cast %197 : vector<2x8x8xf32> to vector<16x8xf32>
    %199 = arith.truncf %198 : vector<16x8xf32> to vector<16x8xbf16>
    %c0_56 = arith.constant 0 : index
    %c0_57 = arith.constant 0 : index
    %c0_58 = arith.constant 0 : index
    %200 = vector.load %arg9[%c0_56, %c0_57, %c0_58] : memref<4x8x32xbf16, #tpu.memory_space<vmem>>, vector<1x8x32xbf16>
    %201 = vector.shape_cast %200 : vector<1x8x32xbf16> to vector<8x32xbf16>
    %cst_59 = arith.constant dense<0.000000e+00> : vector<16x32xf32>
    %202 = tpu.matmul %199, %201, %cst_59 {dimension_numbers = #tpu.dot_dimension_numbers<[1], [0], [0], [1], [0, 0, 1, 1], [], []>} : vector<16x8xbf16>, vector<8x32xbf16>, vector<16x32xf32> -> vector<16x32xf32>
    %203 = vector.extract_strided_slice %196 {offsets = [2, 0, 0], sizes = [2, 8, 8], strides = [1, 1, 1]} : vector<8x8x8xf32> to vector<2x8x8xf32>
    %204 = vector.shape_cast %203 : vector<2x8x8xf32> to vector<16x8xf32>
    %205 = arith.truncf %204 : vector<16x8xf32> to vector<16x8xbf16>
    %c1_60 = arith.constant 1 : index
    %c0_61 = arith.constant 0 : index
    %c0_62 = arith.constant 0 : index
    %206 = vector.load %arg9[%c1_60, %c0_61, %c0_62] : memref<4x8x32xbf16, #tpu.memory_space<vmem>>, vector<1x8x32xbf16>
    %207 = vector.shape_cast %206 : vector<1x8x32xbf16> to vector<8x32xbf16>
    %cst_63 = arith.constant dense<0.000000e+00> : vector<16x32xf32>
    %208 = tpu.matmul %205, %207, %cst_63 {dimension_numbers = #tpu.dot_dimension_numbers<[1], [0], [0], [1], [0, 0, 1, 1], [], []>} : vector<16x8xbf16>, vector<8x32xbf16>, vector<16x32xf32> -> vector<16x32xf32>
    %209 = arith.addf %202, %208 : vector<16x32xf32>
    %210 = vector.extract_strided_slice %196 {offsets = [4, 0, 0], sizes = [2, 8, 8], strides = [1, 1, 1]} : vector<8x8x8xf32> to vector<2x8x8xf32>
    %211 = vector.shape_cast %210 : vector<2x8x8xf32> to vector<16x8xf32>
    %212 = arith.truncf %211 : vector<16x8xf32> to vector<16x8xbf16>
    %c2_64 = arith.constant 2 : index
    %c0_65 = arith.constant 0 : index
    %c0_66 = arith.constant 0 : index
    %213 = vector.load %arg9[%c2_64, %c0_65, %c0_66] : memref<4x8x32xbf16, #tpu.memory_space<vmem>>, vector<1x8x32xbf16>
    %214 = vector.shape_cast %213 : vector<1x8x32xbf16> to vector<8x32xbf16>
    %cst_67 = arith.constant dense<0.000000e+00> : vector<16x32xf32>
    %215 = tpu.matmul %212, %214, %cst_67 {dimension_numbers = #tpu.dot_dimension_numbers<[1], [0], [0], [1], [0, 0, 1, 1], [], []>} : vector<16x8xbf16>, vector<8x32xbf16>, vector<16x32xf32> -> vector<16x32xf32>
    %216 = arith.addf %209, %215 : vector<16x32xf32>
    %217 = vector.extract_strided_slice %196 {offsets = [6, 0, 0], sizes = [2, 8, 8], strides = [1, 1, 1]} : vector<8x8x8xf32> to vector<2x8x8xf32>
    %218 = vector.shape_cast %217 : vector<2x8x8xf32> to vector<16x8xf32>
    %219 = arith.truncf %218 : vector<16x8xf32> to vector<16x8xbf16>
    %c3_68 = arith.constant 3 : index
    %c0_69 = arith.constant 0 : index
    %c0_70 = arith.constant 0 : index
    %220 = vector.load %arg9[%c3_68, %c0_69, %c0_70] : memref<4x8x32xbf16, #tpu.memory_space<vmem>>, vector<1x8x32xbf16>
    %221 = vector.shape_cast %220 : vector<1x8x32xbf16> to vector<8x32xbf16>
    %cst_71 = arith.constant dense<0.000000e+00> : vector<16x32xf32>
    %222 = tpu.matmul %219, %221, %cst_71 {dimension_numbers = #tpu.dot_dimension_numbers<[1], [0], [0], [1], [0, 0, 1, 1], [], []>} : vector<16x8xbf16>, vector<8x32xbf16>, vector<16x32xf32> -> vector<16x32xf32>
    %223 = arith.addf %216, %222 : vector<16x32xf32>
    %224 = vector.broadcast %8 : vector<1x32xf32> to vector<16x32xf32>
    %225 = arith.addf %223, %224 : vector<16x32xf32>
    %226 = arith.addf %133, %225 : vector<16x32xf32>
    %cst_72 = arith.constant dense<0.000000e+00> : vector<16xf32>
    %227 = vector.multi_reduction <add>, %226, %cst_72 [1] : vector<16x32xf32> to vector<16xf32>
    %228 = vector.shape_cast %227 : vector<16xf32> to vector<16x1xf32>
    %cst_73 = arith.constant 3.200000e+01 : f32
    %229 = vector.broadcast %cst_73 : f32 to vector<16x1xf32>
    %230 = arith.divf %228, %229 : vector<16x1xf32>
    %231 = vector.broadcast %230 : vector<16x1xf32> to vector<16x32xf32>
    %232 = arith.subf %226, %231 : vector<16x32xf32>
    %233 = arith.mulf %232, %232 : vector<16x32xf32>
    %cst_74 = arith.constant dense<0.000000e+00> : vector<16xf32>
    %234 = vector.multi_reduction <add>, %233, %cst_74 [1] : vector<16x32xf32> to vector<16xf32>
    %235 = vector.shape_cast %234 : vector<16xf32> to vector<16x1xf32>
    %cst_75 = arith.constant 3.200000e+01 : f32
    %236 = vector.broadcast %cst_75 : f32 to vector<16x1xf32>
    %237 = arith.divf %235, %236 : vector<16x1xf32>
    %238 = vector.broadcast %230 : vector<16x1xf32> to vector<16x32xf32>
    %239 = arith.subf %226, %238 : vector<16x32xf32>
    %cst_76 = arith.constant 9.99999974E-6 : f32
    %240 = vector.broadcast %cst_76 : f32 to vector<16x1xf32>
    %241 = arith.addf %237, %240 : vector<16x1xf32>
    %242 = math.rsqrt %241 : vector<16x1xf32>
    %243 = vector.broadcast %242 : vector<16x1xf32> to vector<16x32xf32>
    %244 = arith.mulf %239, %243 : vector<16x32xf32>
    %245 = vector.broadcast %12 : vector<1x32xf32> to vector<16x32xf32>
    %246 = arith.mulf %244, %245 : vector<16x32xf32>
    %247 = vector.broadcast %13 : vector<1x32xf32> to vector<16x32xf32>
    %248 = arith.addf %246, %247 : vector<16x32xf32>
    %249 = arith.truncf %248 : vector<16x32xf32> to vector<16x32xbf16>
    %c0_77 = arith.constant 0 : index
    %c0_78 = arith.constant 0 : index
    %250 = vector.load %arg10[%c0_77, %c0_78] : memref<32x64xbf16, #tpu.memory_space<vmem>>, vector<32x64xbf16>
    %cst_79 = arith.constant dense<0.000000e+00> : vector<16x64xf32>
    %251 = tpu.matmul %249, %250, %cst_79 {dimension_numbers = #tpu.dot_dimension_numbers<[1], [0], [0], [1], [0, 0, 1, 1], [], []>} : vector<16x32xbf16>, vector<32x64xbf16>, vector<16x64xf32> -> vector<16x64xf32>
    %c0_80 = arith.constant 0 : index
    %c0_81 = arith.constant 0 : index
    %252 = vector.load %arg11[%c0_80, %c0_81] : memref<1x64xf32, #tpu.memory_space<vmem>>, vector<1x64xf32>
    %253 = vector.broadcast %252 : vector<1x64xf32> to vector<16x64xf32>
    %254 = arith.addf %251, %253 : vector<16x64xf32>
    %cst_82 = arith.constant 0.000000e+00 : f32
    %255 = vector.broadcast %cst_82 : f32 to vector<16x64xf32>
    %256 = arith.maximumf %254, %255 : vector<16x64xf32>
    %257 = arith.truncf %256 : vector<16x64xf32> to vector<16x64xbf16>
    %c0_83 = arith.constant 0 : index
    %c0_84 = arith.constant 0 : index
    %258 = vector.load %arg12[%c0_83, %c0_84] : memref<64x32xbf16, #tpu.memory_space<vmem>>, vector<64x32xbf16>
    %cst_85 = arith.constant dense<0.000000e+00> : vector<16x32xf32>
    %259 = tpu.matmul %257, %258, %cst_85 {dimension_numbers = #tpu.dot_dimension_numbers<[1], [0], [0], [1], [0, 0, 1, 1], [], []>} : vector<16x64xbf16>, vector<64x32xbf16>, vector<16x32xf32> -> vector<16x32xf32>
    %260 = vector.broadcast %9 : vector<1x32xf32> to vector<16x32xf32>
    %261 = arith.addf %259, %260 : vector<16x32xf32>
    %262 = arith.addf %248, %261 : vector<16x32xf32>
    %cst_86 = arith.constant dense<0.000000e+00> : vector<16xf32>
    %263 = vector.multi_reduction <add>, %262, %cst_86 [1] : vector<16x32xf32> to vector<16xf32>
    %264 = vector.shape_cast %263 : vector<16xf32> to vector<16x1xf32>
    %cst_87 = arith.constant 3.200000e+01 : f32
    %265 = vector.broadcast %cst_87 : f32 to vector<16x1xf32>
    %266 = arith.divf %264, %265 : vector<16x1xf32>
    %267 = vector.broadcast %266 : vector<16x1xf32> to vector<16x32xf32>
    %268 = arith.subf %262, %267 : vector<16x32xf32>
    %269 = arith.mulf %268, %268 : vector<16x32xf32>
    %cst_88 = arith.constant dense<0.000000e+00> : vector<16xf32>
    %270 = vector.multi_reduction <add>, %269, %cst_88 [1] : vector<16x32xf32> to vector<16xf32>
    %271 = vector.shape_cast %270 : vector<16xf32> to vector<16x1xf32>
    %cst_89 = arith.constant 3.200000e+01 : f32
    %272 = vector.broadcast %cst_89 : f32 to vector<16x1xf32>
    %273 = arith.divf %271, %272 : vector<16x1xf32>
    %274 = vector.broadcast %266 : vector<16x1xf32> to vector<16x32xf32>
    %275 = arith.subf %262, %274 : vector<16x32xf32>
    %cst_90 = arith.constant 9.99999974E-6 : f32
    %276 = vector.broadcast %cst_90 : f32 to vector<16x1xf32>
    %277 = arith.addf %273, %276 : vector<16x1xf32>
    %278 = math.rsqrt %277 : vector<16x1xf32>
    %279 = vector.broadcast %278 : vector<16x1xf32> to vector<16x32xf32>
    %280 = arith.mulf %275, %279 : vector<16x32xf32>
    %281 = vector.broadcast %14 : vector<1x32xf32> to vector<16x32xf32>
    %282 = arith.mulf %280, %281 : vector<16x32xf32>
    %283 = vector.broadcast %15 : vector<1x32xf32> to vector<16x32xf32>
    %284 = arith.addf %282, %283 : vector<16x32xf32>
    %c0_91 = arith.constant 0 : index
    %c0_92 = arith.constant 0 : index
    %285 = vector.load %arg14[%c0_91, %c0_92] : memref<16x32xf32, #tpu.memory_space<vmem>>, vector<16x32xf32>
    tpu.vector_store %arg14[%c0_91, %c0_92], %284 {strides = array<i32>} : memref<16x32xf32, #tpu.memory_space<vmem>>, vector<16x32xf32>,
    return
  }
  func.func @transform_0(%arg0: i32) -> (i32, i32, i32) {
    %c0_i32 = arith.constant 0 : i32
    %c0_i32_0 = arith.constant 0 : i32
    %c0_i32_1 = arith.constant 0 : i32
    %c0_i32_2 = arith.constant 0 : i32
    return %c0_i32, %c0_i32_0, %c0_i32_1 : i32, i32, i32
  }
  func.func @transform_1(%arg0: i32) -> (i32, i32, i32) {
    %c0_i32 = arith.constant 0 : i32
    %c0_i32_0 = arith.constant 0 : i32
    %c0_i32_1 = arith.constant 0 : i32
    %c0_i32_2 = arith.constant 0 : i32
    return %c0_i32, %c0_i32_0, %c0_i32_1 : i32, i32, i32
  }
  func.func @transform_2(%arg0: i32) -> (i32, i32, i32) {
    %c0_i32 = arith.constant 0 : i32
    %c0_i32_0 = arith.constant 0 : i32
    %c0_i32_1 = arith.constant 0 : i32
    %c0_i32_2 = arith.constant 0 : i32
    return %c0_i32, %c0_i32_0, %c0_i32_1 : i32, i32, i32
  }
  func.func @transform_3(%arg0: i32) -> (i32, i32, i32) {
    %c0_i32 = arith.constant 0 : i32
    %c0_i32_0 = arith.constant 0 : i32
    %c0_i32_1 = arith.constant 0 : i32
    %c0_i32_2 = arith.constant 0 : i32
    return %c0_i32, %c0_i32_0, %c0_i32_1 : i32, i32, i32
  }
  func.func @transform_4(%arg0: i32) -> (i32, i32) {
    %c0_i32 = arith.constant 0 : i32
    %c0_i32_0 = arith.constant 0 : i32
    %c0_i32_1 = arith.constant 0 : i32
    return %c0_i32, %c0_i32_0 : i32, i32
  }
  func.func @transform_5(%arg0: i32) -> (i32, i32) {
    %c0_i32 = arith.constant 0 : i32
    %c0_i32_0 = arith.constant 0 : i32
    %c0_i32_1 = arith.constant 0 : i32
    return %c0_i32, %c0_i32_0 : i32, i32
  }
  func.func @transform_6(%arg0: i32) -> (i32, i32, i32) {
    %c0_i32 = arith.constant 0 : i32
    %c0_i32_0 = arith.constant 0 : i32
    %c0_i32_1 = arith.constant 0 : i32
    %c0_i32_2 = arith.constant 0 : i32
    return %c0_i32, %c0_i32_0, %c0_i32_1 : i32, i32, i32
  }
  func.func @transform_7(%arg0: i32) -> (i32, i32, i32) {
    %c0_i32 = arith.constant 0 : i32
    %c0_i32_0 = arith.constant 0 : i32
    %c0_i32_1 = arith.constant 0 : i32
    %c0_i32_2 = arith.constant 0 : i32
    return %c0_i32, %c0_i32_0, %c0_i32_1 : i32, i32, i32
  }
  func.func @transform_8(%arg0: i32) -> (i32, i32, i32) {
    %c0_i32 = arith.constant 0 : i32
    %c0_i32_0 = arith.constant 0 : i32
    %c0_i32_1 = arith.constant 0 : i32
    %c0_i32_2 = arith.constant 0 : i32
    return %c0_i32, %c0_i32_0, %c0_i32_1 : i32, i32, i32
  }
  func.func @transform_9(%arg0: i32) -> (i32, i32) {
    %c0_i32 = arith.constant 0 : i32
    %c0_i32_0 = arith.constant 0 : i32
    %c0_i32_1 = arith.constant 0 : i32
    return %c0_i32, %c0_i32_0 : i32, i32
  }
  func.func @transform_10(%arg0: i32) -> (i32, i32) {
    %c0_i32 = arith.constant 0 : i32
    %c0_i32_0 = arith.constant 0 : i32
    %c0_i32_1 = arith.constant 0 : i32
    return %c0_i32, %c0_i32_0 : i32, i32
  }
  func.func @transform_11(%arg0: i32) -> (i32, i32) {
    %c0_i32 = arith.constant 0 : i32
    %c0_i32_0 = arith.constant 0 : i32
    %c0_i32_1 = arith.constant 0 : i32
    return %c0_i32, %c0_i32_0 : i32, i32
  }
  func.func @transform_12(%arg0: i32) -> (i32, i32) {
    %c0_i32 = arith.constant 0 : i32
    %c0_i32_0 = arith.constant 0 : i32
    %c0_i32_1 = arith.constant 0 : i32
    return %c0_i32, %c0_i32_0 : i32, i32
  }
  func.func @transform_13(%arg0: i32) -> (i32, i32) {
    %c0_i32 = arith.constant 0 : i32
    %c0_i32_0 = arith.constant 0 : i32
    %c0_i32_1 = arith.constant 0 : i32
    return %c0_i32, %c0_i32_0 : i32, i32
  }
}

</mosaic_0001>

<bundles_post_ra>
// kernel: decoder_layer.1
= control target key start
LH: loop header
LB: loop body
LE: loop exit
PB: predicated region body
PF: predicated region fallthrough
CT: control target
= control target key end

     0   :  { %vm78_vm0 = vcmask 261120   ;;  %s2202_s21 = smov 112   ;;  %s2203_s22 = smov 120   ;;  %vm222_vm1 = vcmask 64512   ;;  %vm517_vm2 = vcmask 1043456   ;;  %vm1271_vm10 = vcmask 130048   ;;  %s2724_s4 = inlined_call_operand.vmem [shape: bf16[32,64], index: 4, kind: input, shape index: {}]   ;;  %s2725_s0 = inlined_call_operand.vmem [shape: f32[2,8,32], index: 0, kind: input, shape index: {}]   ;;  %s2726_s2 = inlined_call_operand.vmem [shape: f32[2,8,32], index: 2, kind: input, shape index: {}]   ;;  %s2727_s12 = inlined_call_operand.vmem [shape: f32[15,32], index: 12, kind: input, shape index: {}]   ;;  %s2728_s5 = inlined_call_operand.vmem [shape: bf16[32,32], index: 5, kind: input, shape index: {}]   ;;  %s2729_s6 = inlined_call_operand.vmem [shape: bf16[4,8,32], index: 6, kind: input, shape index: {}]   ;;  %s2730_s7 = inlined_call_operand.vmem [shape: bf16[3,32,32], index: 7, kind: input, shape index: {}]   ;;  %s2731_s1 = inlined_call_operand.vmem [shape: f32[2,16,32], index: 1, kind: input, shape index: {}]   ;;  %s2732_s3 = inlined_call_operand.vmem [shape: f32[2,16,32], index: 3, kind: input, shape index: {}]   ;;  %s2733_s8 = inlined_call_operand.vmem [shape: bf16[4,8,32], index: 8, kind: input, shape index: {}]   ;;  %s2734_s10 = inlined_call_operand.vmem [shape: f32[1,64], index: 10, kind: input, shape index: {}]   ;;  %s2735_s9 = inlined_call_operand.vmem [shape: bf16[32,64], index: 9, kind: input, shape index: {}]   ;;  %s2736_s11 = inlined_call_operand.vmem [shape: bf16[64,32], index: 11, kind: input, shape index: {}]   ;;  %s2737_s13 = inlined_call_operand.vmem [shape: f32[16,32], index: 13, kind: output, shape index: {}]  }
   0x1   :  { %v1988_v0 = vld [vmem:[%s2724_s4 + $0x8] sm:$0xff]  ;;  %v2282_v1 = vld [vmem:[%s2725_s0] sm:$0xff]  ;;  %s2204_s23 = smov 104  }
   0x2   :  { %v2287_v2 = vld [vmem:[%s2725_s0 + $0x8] sm:$0xff]  ;;  %v2292_v3 = vld [vmem:[%s2726_s2] sm:$0xff]  ;;  %88 = vmatpush.bf16.msra.mxu0 %v1988_v0 }
   0x3   :  { %v2297_v4 = vld [vmem:[%s2726_s2 + $0x8] sm:$0xff]  ;;  %v1987_v5 = vld [vmem:[%s2724_s4] sm:$0xff]  ;;  %v59_v6 = vadd.f32 %v2292_v3, %v2282_v1  ;;  %s2200_s2 = smov 32   ;;  %s2201_s4 = smov 96   ;;  %v106_v62 = vpack.c.bf16 %v2287_v2, %v2282_v1 }
   0x4   :  { %v60_v7 = vadd.f32 %v2297_v4, %v2287_v2  ;;  %v2309_v8 = vld [vmem:[%s2727_s12] sm:$0xff]  ;;  %v1990_v60 = vld [vmem:[%s2728_s5 + $0x8] sm:$0xff] }
   0x5   :  { %v99_v9 = vperm.slane %v2309_v8, 1  ;;  %v96_v23 = vperm.slane %v2309_v8, 0  ;;  %133 = vmatpush.bf16.msra.mxu1 %v1990_v60  ;;  %v1989_v61 = vld [vmem:[%s2728_s5] sm:$0xff] }
   0x6   :  { %v61_v10 = vpack.c.bf16 %v60_v7, %v59_v6  ;;  %89 = vmatpush.bf16.msra.mxu0 %v1987_v5 }
   0x7   :  { %101 = vrot.lane.b32.xlu0 %v99_v9, %s2200_s2 }
   0x9   :  { %1868 = vmatmul.msk.bf16.vlgmr.msra.gmra.mxu0 %vm78_vm0, %v61_v10  ;;  %134 = vmatpush.bf16.msra.mxu1 %v1989_v61 }
   0xc   :  { %1877 = vmatmul.msk.bf16.vlgmr.msra.gmra.mxu1 %vm78_vm0, %v106_v62 }
  0x79   :  { %v102_v11 = vpop.permute.xlu0 %101 }
  0x86   :  { %v91_v12 = vpop.f32.mrf.mxu0 }
  0x87   :  { %v104_v13 = vadd.f32 %v102_v11, %v91_v12  ;;  %v97_v26 = vadd.f32 %v96_v23, %v91_v12 }
  0x89   :  { %v209_v14 = vpack.c.bf16 %v104_v13, %v104_v13  ;;  %v201_v27 = vpack.c.bf16 %v97_v26, %v97_v26 }
  0x8b   :  { %v218_v15 = vunpack.c.l.b16 %v209_v14 }
  0x8d   :  { %v219_v16 = vpack.c.b16 %v218_v15, %v218_v15 }
  0x8e   :  { %v93_v17 = vpop.f32.mrf.mxu0 }
  0x8f   :  { %v105_v18 = vadd.f32 %v102_v11, %v93_v17  ;;  %220 = vrot.lane.b32.xlu2 %v219_v16, %s2201_s4  ;;  %v98_v30 = vadd.f32 %v96_v23, %v93_v17 }
  0x91   :  { %v2014_v19 = vpack.i.bf16 %v105_v18, %v104_v13  ;;  %v210_v20 = vpack.c.bf16 %v105_v18, %v105_v18  ;;  %v202_v31 = vpack.c.bf16 %v98_v30, %v98_v30  ;;  %v2024_v55 = vpack.i.bf16 %v98_v30, %v97_v26 }
  0x93   :  { %2015 = vrot.lane.b32.xlu1 %v2014_v19, %s2202_s21  ;;  %2010 = vrot.lane.b32.xlu0 %v2014_v19, %s2203_s22  ;;  %v243_v21 = vunpack.c.l.b16 %v210_v20 }
  0x95   :  { %v244_v22 = vpack.c.b16 %v243_v21, %v243_v21 }
  0x97   :  { %245 = vrot.lane.b32.xlu2 %v244_v22, %s2201_s4 }
  0x9b   :  { %2020 = vrot.lane.b32.xlu1 %v2014_v19, %s2204_s23 }
  0xe9   :  { %v221_v24 = vpop.permute.xlu2 %220 }
  0xea   :  { %v227_v25 = vsel %vm222_vm1, %v221_v24, 0 }
  0xeb   :  { %236 = vmatpush.bf16.xpose.msra.mxu2 %v227_v25 }
  0xf1   :  { %v246_v28 = vpop.permute.xlu2 %245 }
  0xf2   :  { %1878 = vmatmul.msk.bf16.vlgmr.msra.gmra.mxu2 %vm222_vm1, %v201_v27  ;;  %v251_v29 = vsel %vm222_vm1, %v246_v28, 0 }
  0xf3   :  { %260 = vmatpush.bf16.xpose.msra.mxu3 %v251_v29 }
  0xfa   :  { %1879 = vmatmul.msk.bf16.vlgmr.msra.gmra.mxu3 %vm222_vm1, %v202_v31 }
 0x105   :  { %v2016_v32 = vpop.permute.xlu1 %2015  ;;  %v2011_v33 = vpop.permute.xlu0 %2010 }
 0x106   :  { %v2017_v34 = vunpack.i.l.bf16 %v2016_v32  ;;  %v2013_v35 = vunpack.i.h.bf16 %v2011_v33  ;;  %v2012_v36 = vunpack.i.l.bf16 %v2011_v33  ;;  %v2018_v37 = vunpack.i.h.bf16 %v2016_v32 }
 0x108   :  { %v213_v38 = vpack.c.bf16 %v2017_v34, %v2017_v34  ;;  %v212_v39 = vpack.c.bf16 %v2013_v35, %v2013_v35  ;;  %v211_v40 = vpack.c.bf16 %v2012_v36, %v2012_v36  ;;  %v214_v44 = vpack.c.bf16 %v2018_v37, %v2018_v37 }
 0x109   :  { %v111_v37 = vperm.slane %v2309_v8, 2 }
 0x10a   :  { %v315_v41 = vunpack.c.l.b16 %v213_v38  ;;  %v291_v42 = vunpack.c.l.b16 %v212_v39  ;;  %v267_v43 = vunpack.c.l.b16 %v211_v40  ;;  %v339_v49 = vunpack.c.l.b16 %v214_v44  ;;  %v136_v38 = vpop.f32.mrf.mxu1 }
 0x10b   :  { %v137_v39 = vadd.f32 %v136_v38, %v111_v37 }
 0x10c   :  { %v316_v45 = vpack.c.b16 %v315_v41, %v315_v41  ;;  %v292_v46 = vpack.c.b16 %v291_v42, %v291_v42  ;;  %v268_v47 = vpack.c.b16 %v267_v43, %v267_v43  ;;  %v340_v52 = vpack.c.b16 %v339_v49, %v339_v49 }
 0x10d   :  { %v2021_v48 = vpop.permute.xlu1 %2020  ;;  %v506_v40 = vpack.c.bf16 %v137_v39, %v137_v39 }
 0x10e   :  { %293 = vrot.lane.b32.xlu1 %v292_v46, %s2201_s4  ;;  %269 = vrot.lane.b32.xlu0 %v268_v47, %s2201_s4  ;;  %v2023_v50 = vunpack.i.h.bf16 %v2021_v48  ;;  %v2022_v51 = vunpack.i.l.bf16 %v2021_v48 }
 0x10f   :  { %317 = vrot.lane.b32.xlu2 %v316_v45, %s2201_s4  ;;  %v519_v42 = vsel %vm517_vm2, %v506_v40, 0 }
 0x110   :  { %v216_v53 = vpack.c.bf16 %v2023_v50, %v2023_v50  ;;  %v215_v54 = vpack.c.bf16 %v2022_v51, %v2022_v51 }
 0x112   :  { %v387_v56 = vunpack.c.l.b16 %v216_v53  ;;  %v363_v57 = vunpack.c.l.b16 %v215_v54  ;;  %v138_v41 = vpop.f32.mrf.mxu1 }
 0x113   :  { %v139_v43 = vadd.f32 %v138_v41, %v111_v37 }
 0x114   :  { %v388_v58 = vpack.c.b16 %v387_v56, %v387_v56  ;;  %v364_v59 = vpack.c.b16 %v363_v57, %v363_v57 }
 0x115   :  { %v507_v44 = vpack.c.bf16 %v139_v43, %v139_v43  ;;  %v2363_v45 = vpack.i.bf16 %v139_v43, %v137_v39 }
 0x116   :  { %341 = vrot.lane.b32.xlu0 %v340_v52, %s2201_s4  ;;  %2025 = vrot.lane.b32.xlu1 %v2024_v55, %s2203_s22 }
 0x117   :  { %2030 = vrot.lane.b32.xlu2 %v2024_v55, %s2202_s21  ;;  %v538_v46 = vsel %vm517_vm2, %v507_v44, 0 }
 0x11e   :  { %365 = vrot.lane.b32.xlu0 %v364_v59, %s2201_s4  ;;  %389 = vrot.lane.b32.xlu1 %v388_v58, %s2201_s4 }
 0x11f   :  { %2035 = vrot.lane.b32.xlu2 %v2024_v55, %s2204_s23 }
 0x169   :  { %v318_v63 = vpop.permute.xlu2 %317 }
 0x16a   :  { %v323_v0 = vsel %vm222_vm1, %v318_v63, 0 }
 0x16b   :  { %332 = vmatpush.bf16.xpose.msrb.mxu2 %v323_v0 }
 0x171   :  { %v2031_v5 = vpop.permute.xlu2 %2030 }
 0x172   :  { %v2032_v6 = vunpack.i.l.bf16 %v2031_v5  ;;  %v2033_v24 = vunpack.i.h.bf16 %v2031_v5 }
 0x173   :  { %528 = vmatpush.bf16.msra.mxu2 %v519_v42 }
 0x174   :  { %v205_v7 = vpack.c.bf16 %v2032_v6, %v2032_v6  ;;  %v206_v27 = vpack.c.bf16 %v2033_v24, %v2033_v24 }
 0x175   :  { %v2342_v9 = vpop.f32.mrf.mxu2 }
 0x176   :  { %1882 = vmatmul.msk.bf16.vlgmr.msrb.gmra.mxu2 %vm222_vm1, %v205_v7  ;;  %v410_v10 = vsel %vm222_vm1, %v2342_v9, -inf }
 0x177   :  { %411 = vmax.xlane.f32.xlu0 %v410_v10 }
 0x179   :  { %v2036_v32 = vpop.permute.xlu2 %2035 }
 0x17a   :  { %v2038_v33 = vunpack.i.h.bf16 %v2036_v32  ;;  %v2037_v34 = vunpack.i.l.bf16 %v2036_v32 }
 0x17c   :  { %v208_v35 = vpack.c.bf16 %v2038_v33, %v2038_v33  ;;  %v207_v36 = vpack.c.bf16 %v2037_v34, %v2037_v34 }
 0x17d   :  { %v240_v11 = vpop.f32.mrf.mxu2  ;;  %v2347_v12 = vpop.f32.mrf.mxu3 }
 0x17e   :  { %v413_v13 = vsel %vm222_vm1, %v2347_v12, -inf }
 0x17f   :  { %414 = vmax.xlane.f32.xlu1 %v413_v13 }
 0x180   :  { %v294_v14 = vpop.permute.xlu1 %293  ;;  %v270_v15 = vpop.permute.xlu0 %269 }
 0x181   :  { %v275_v16 = vsel %vm222_vm1, %v270_v15, 0  ;;  %v299_v17 = vsel %vm222_vm1, %v294_v14, 0 }
 0x182   :  { %284 = vmatpush.bf16.xpose.msrb.mxu0 %v275_v16  ;;  %308 = vmatpush.bf16.xpose.msrb.mxu1 %v299_v17 }
 0x185   :  { %v264_v18 = vpop.f32.mrf.mxu3 }
 0x188   :  { %v342_v19 = vpop.permute.xlu0 %341  ;;  %v2026_v20 = vpop.permute.xlu1 %2025 }
 0x189   :  { %v2028_v21 = vunpack.i.h.bf16 %v2026_v20  ;;  %v2027_v22 = vunpack.i.l.bf16 %v2026_v20  ;;  %v347_v23 = vsel %vm222_vm1, %v342_v19, 0 }
 0x18a   :  { %356 = vmatpush.bf16.xpose.msrb.mxu3 %v347_v23 }
 0x18b   :  { %v204_v25 = vpack.c.bf16 %v2028_v21, %v2028_v21  ;;  %v203_v26 = vpack.c.bf16 %v2027_v22, %v2027_v22 }
 0x18d   :  { %1880 = vmatmul.msk.bf16.vlgmr.msrb.gmra.mxu0 %vm222_vm1, %v203_v26  ;;  %1881 = vmatmul.msk.bf16.vlgmr.msrb.gmra.mxu1 %vm222_vm1, %v204_v25 }
 0x190   :  { %v366_v28 = vpop.permute.xlu0 %365  ;;  %v390_v29 = vpop.permute.xlu1 %389 }
 0x191   :  { %v371_v30 = vsel %vm222_vm1, %v366_v28, 0  ;;  %v395_v31 = vsel %vm222_vm1, %v390_v29, 0  ;;  %1883 = vmatmul.msk.bf16.vlgmr.msrb.gmra.mxu3 %vm222_vm1, %v206_v27 }
 0x192   :  { %380 = vmatpush.bf16.xpose.msra.mxu0 %v371_v30  ;;  %404 = vmatpush.bf16.xpose.msra.mxu1 %v395_v31 }
 0x193   :  { %547 = vmatpush.bf16.msra.mxu3 %v538_v46 }
 0x19d   :  { %1884 = vmatmul.msk.bf16.vlgmr.msra.gmra.mxu0 %vm222_vm1, %v207_v36  ;;  %1885 = vmatmul.msk.bf16.vlgmr.msra.gmra.mxu1 %vm222_vm1, %v208_v35 }
 0x1ea   :  { %v412_v50 = vpop.xlane.xlu0 %411 }
 0x1eb   :  { %v434_v54 = vsub.f32 %v2342_v9, %v412_v50 }
 0x1ed   :  { %v442_v55 = vmul.f32 1.442695, %v434_v54 }
 0x1ef   :  { %2120 = vpow2.f32 %v442_v55 }
 0x1f2   :  { %v415_v11 = vpop.xlane.xlu1 %414 }
 0x1f3   :  { %v435_v13 = vsub.f32 %v2347_v12, %v415_v11 }
 0x1f5   :  { %v2121_v61 = vpop.eup %2120  ;;  %v444_v14 = vmul.f32 1.442695, %v435_v13 }
 0x1f6   :  { %v458_v7 = vsel %vm222_vm1, %v2121_v61, 0.0 }
 0x1f7   :  { %2122 = vpow2.f32 %v444_v14 }
 0x1f9   :  { %v334_v47 = vpop.f32.mrf.mxu2 }
 0x1fa   :  { %v422_v48 = vsel %vm222_vm1, %v334_v47, -inf }
 0x1fb   :  { %423 = vmax.xlane.f32.xlu0 %v422_v48 }
 0x1fd   :  { %v2380_v15 = vpop.eup %2122 }
 0x1fe   :  { %v461_v16 = vsel %vm222_vm1, %v2380_v15, 0.0 }
 0x201   :  { %v336_v49 = vpop.f32.mrf.mxu2 }
 0x20a   :  { %v286_v51 = vpop.f32.mrf.mxu0  ;;  %v310_v52 = vpop.f32.mrf.mxu1 }
 0x20b   :  { %v416_v53 = vsel %vm222_vm1, %v286_v51, -inf  ;;  %v419_v58 = vsel %vm222_vm1, %v310_v52, -inf }
 0x20c   :  { %417 = vmax.xlane.f32.xlu2 %v416_v53 }
 0x212   :  { %v288_v56 = vpop.f32.mrf.mxu0  ;;  %v312_v57 = vpop.f32.mrf.mxu1 }
 0x214   :  { %420 = vmax.xlane.f32.xlu2 %v419_v58  ;;  %v358_v59 = vpop.f32.mrf.mxu3 }
 0x215   :  { %v425_v60 = vsel %vm222_vm1, %v358_v59, -inf }
 0x216   :  { %426 = vmax.xlane.f32.xlu1 %v425_v60 }
 0x21a   :  { %v382_v62 = vpop.f32.mrf.mxu0  ;;  %v2371_v63 = vpop.f32.mrf.mxu1 }
 0x21b   :  { %v431_v0 = vsel %vm222_vm1, %v2371_v63, -inf  ;;  %v428_v5 = vsel %vm222_vm1, %v382_v62, -inf }
 0x21c   :  { %432 = vmax.xlane.f32.xlu0 %v431_v0  ;;  %429 = vmax.xlane.f32.xlu2 %v428_v5  ;;  %v360_v6 = vpop.f32.mrf.mxu3 }
 0x21e   :  { %459 = vadd.xlane.f32.xlu1 %v458_v7 }
 0x222   :  { %v384_v9 = vpop.f32.mrf.mxu0  ;;  %v408_v10 = vpop.f32.mrf.mxu1 }
 0x234   :  { %2040 = vrot.lane.b32.xlu2 %v2363_v45, %s2203_s22 }
 0x25d   :  { %462 = vadd.xlane.f32.xlu2 %v461_v16 }
 0x26e   :  { %v424_v17 = vpop.xlane.xlu0 %423 }
 0x26f   :  { %v438_v20 = vsub.f32 %v334_v47, %v424_v17 }
 0x271   :  { %v450_v22 = vmul.f32 1.442695, %v438_v20 }
 0x275   :  { %2050 = vrot.lane.b32.xlu2 %v2363_v45, %s2204_s23 }
 0x27f   :  { %v418_v18 = vpop.xlane.xlu2 %417 }
 0x280   :  { %v436_v19 = vsub.f32 %v286_v51, %v418_v18 }
 0x282   :  { %v446_v21 = vmul.f32 1.442695, %v436_v19 }
 0x284   :  { %2124 = vpow2.f32 %v446_v21 }
 0x285   :  { %2126 = vpow2.f32 %v450_v22 }
 0x287   :  { %v421_v23 = vpop.xlane.xlu2 %420 }
 0x288   :  { %v437_v12 = vsub.f32 %v310_v52, %v421_v23 }
 0x289   :  { %v427_v24 = vpop.xlane.xlu1 %426 }
 0x28a   :  { %v2386_v25 = vpop.eup %2124  ;;  %v448_v26 = vmul.f32 1.442695, %v437_v12  ;;  %v439_v27 = vsub.f32 %v358_v59, %v427_v24 }
 0x28b   :  { %v464_v28 = vsel %vm222_vm1, %v2386_v25, 0.0  ;;  %v2390_v31 = vpop.eup %2126 }
 0x28c   :  { %2128 = vpow2.f32 %v448_v26  ;;  %465 = vadd.xlane.f32.xlu0 %v464_v28  ;;  %v452_v29 = vmul.f32 1.442695, %v439_v27  ;;  %v470_v35 = vsel %vm222_vm1, %v2390_v31, 0.0 }
 0x28e   :  { %2130 = vpow2.f32 %v452_v29 }
 0x28f   :  { %v430_v30 = vpop.xlane.xlu2 %429  ;;  %v433_v39 = vpop.xlane.xlu0 %432 }
 0x290   :  { %v440_v34 = vsub.f32 %v382_v62, %v430_v30  ;;  %v441_v46 = vsub.f32 %v2371_v63, %v433_v39 }
 0x291   :  { %v460_v32 = vpop.xlane.xlu1 %459 }
 0x292   :  { %v2129_v33 = vpop.eup %2128  ;;  %2132 = vrcp.f32 %v460_v32  ;;  %v454_v37 = vmul.f32 1.442695, %v440_v34  ;;  %v456_v53 = vmul.f32 1.442695, %v441_v46 }
 0x293   :  { %v467_v36 = vsel %vm222_vm1, %v2129_v33, 0.0 }
 0x294   :  { %471 = vadd.xlane.f32.xlu0 %v470_v35  ;;  %468 = vadd.xlane.f32.xlu1 %v467_v36  ;;  %v2395_v38 = vpop.eup %2130  ;;  %2134 = vpow2.f32 %v454_v37 }
 0x295   :  { %v473_v50 = vsel %vm222_vm1, %v2395_v38, 0.0  ;;  %2136 = vpow2.f32 %v456_v53 }
 0x297   :  { %v2041_v40 = vpop.permute.xlu2 %2040 }
 0x298   :  { %v2133_v41 = vpop.eup %2132  ;;  %v2043_v42 = vunpack.i.h.bf16 %v2041_v40  ;;  %v2042_v43 = vunpack.i.l.bf16 %v2041_v40 }
 0x299   :  { %v490_v44 = vmul.f32 %v2133_v41, %v2121_v61 }
 0x29a   :  { %v509_v47 = vpack.c.bf16 %v2043_v42, %v2043_v42  ;;  %v508_v48 = vpack.c.bf16 %v2042_v43, %v2042_v43  ;;  %v2135_v54 = vpop.eup %2134  ;;  %v668_v42 = vld [vmem:[%s2729_s6] sm:$0xf] }
 0x29b   :  { %v498_v49 = vpack.c.bf16 %v490_v44, %v490_v44  ;;  %v476_v55 = vsel %vm222_vm1, %v2135_v54, 0.0  ;;  %v2137_v56 = vpop.eup %2136  ;;  %v696_v43 = vsel %vm517_vm2, %v668_v42, 0 }
 0x29c   :  { %474 = vadd.xlane.f32.xlu1 %v473_v50  ;;  %v557_v51 = vsel %vm517_vm2, %v508_v48, 0  ;;  %v576_v52 = vsel %vm517_vm2, %v509_v47, 0  ;;  %v479_v57 = vsel %vm222_vm1, %v2137_v56, 0.0  ;;  %v1894_v48 = vld [vmem:[%s2729_s6 + $0x4] sm:$0xf] }
 0x29d   :  { %1886 = vmatmul.msk.bf16.vlgmr.msra.gmra.mxu2 %vm222_vm1, %v498_v49  ;;  %566 = vmatpush.bf16.msrb.mxu0 %v557_v51  ;;  %v676_v49 = vsel %vm517_vm2, %v1894_v48, 0  ;;  %v1897_v50 = vld [vmem:[%s2729_s6 + $0x8] sm:$0xf]  ;;  %v58_v48 = vld [vmem:[%s2732_s3 + $0x18] sm:$0xff] }
 0x29e   :  { %585 = vmatpush.bf16.msrb.mxu1 %v576_v52  ;;  %v719_v51 = vsel %vm517_vm2, %v1897_v50, 0  ;;  %v1899_v52 = vld [vmem:[%s2729_s6 + $0xc] sm:$0xf] }
 0x2a4   :  { %477 = vadd.xlane.f32.xlu1 %v476_v55 }
 0x2a8   :  { %2045 = vrot.lane.b32.xlu0 %v2363_v45, %s2202_s21 }
 0x2ac   :  { %480 = vadd.xlane.f32.xlu1 %v479_v57 }
 0x2d0   :  { %v463_v58 = vpop.xlane.xlu2 %462 }
 0x2d1   :  { %2138 = vrcp.f32 %v463_v58 }
 0x2d7   :  { %v2139_v59 = vpop.eup %2138 }
 0x2d8   :  { %v491_v60 = vmul.f32 %v2139_v59, %v2380_v15  ;;  %v2051_v61 = vpop.permute.xlu2 %2050 }
 0x2d9   :  { %v2053_v62 = vunpack.i.h.bf16 %v2051_v61  ;;  %v2052_v63 = vunpack.i.l.bf16 %v2051_v61 }
 0x2da   :  { %v499_v0 = vpack.c.bf16 %v491_v60, %v491_v60 }
 0x2db   :  { %v513_v5 = vpack.c.bf16 %v2053_v62, %v2053_v62  ;;  %v512_v6 = vpack.c.bf16 %v2052_v63, %v2052_v63 }
 0x2dc   :  { %1887 = vmatmul.msk.bf16.vlgmr.msra.gmra.mxu3 %vm222_vm1, %v499_v0 }
 0x2dd   :  { %v633_v7 = vsel %vm517_vm2, %v512_v6, 0  ;;  %v652_v45 = vsel %vm517_vm2, %v513_v5, 0 }
 0x2de   :  { %642 = vmatpush.bf16.msra.mxu0 %v633_v7  ;;  %661 = vmatpush.bf16.msra.mxu1 %v652_v45 }
 0x2ff   :  { %v466_v9 = vpop.xlane.xlu0 %465 }
 0x300   :  { %2140 = vrcp.f32 %v466_v9 }
 0x306   :  { %v2141_v10 = vpop.eup %2140 }
 0x307   :  { %v492_v11 = vmul.f32 %v2141_v10, %v2386_v25  ;;  %v469_v13 = vpop.xlane.xlu1 %468  ;;  %v472_v17 = vpop.xlane.xlu0 %471 }
 0x308   :  { %2142 = vrcp.f32 %v469_v13 }
 0x309   :  { %v500_v14 = vpack.c.bf16 %v492_v11, %v492_v11  ;;  %2144 = vrcp.f32 %v472_v17 }
 0x30b   :  { %1888 = vmatmul.msk.bf16.vlgmr.msrb.gmra.mxu0 %vm222_vm1, %v500_v14 }
 0x30c   :  { %728 = vmatpush.bf16.msrb.mxu0 %v719_v51 }
 0x30e   :  { %v2143_v15 = vpop.eup %2142 }
 0x30f   :  { %v475_v16 = vpop.xlane.xlu1 %474  ;;  %v493_v18 = vmul.f32 %v2143_v15, %v2129_v33  ;;  %v2145_v21 = vpop.eup %2144  ;;  %v762_v15 = vperm.slane %v2309_v8, 6 }
 0x310   :  { %2146 = vrcp.f32 %v475_v16  ;;  %v494_v25 = vmul.f32 %v2145_v21, %v2390_v31 }
 0x311   :  { %v501_v19 = vpack.c.bf16 %v493_v18, %v493_v18 }
 0x312   :  { %v502_v36 = vpack.c.bf16 %v494_v25, %v494_v25 }
 0x313   :  { %1889 = vmatmul.msk.bf16.vlgmr.msrb.gmra.mxu1 %vm222_vm1, %v501_v19 }
 0x316   :  { %v2147_v22 = vpop.eup %2146 }
 0x317   :  { %v478_v20 = vpop.xlane.xlu1 %477  ;;  %v495_v26 = vmul.f32 %v2147_v22, %v2395_v38 }
 0x318   :  { %2148 = vrcp.f32 %v478_v20 }
 0x319   :  { %v503_v37 = vpack.c.bf16 %v495_v26, %v495_v26 }
 0x31a   :  { %v2046_v23 = vpop.permute.xlu0 %2045 }
 0x31b   :  { %v2048_v12 = vunpack.i.h.bf16 %v2046_v23  ;;  %v2047_v24 = vunpack.i.l.bf16 %v2046_v23 }
 0x31d   :  { %v511_v27 = vpack.c.bf16 %v2048_v12, %v2048_v12  ;;  %v510_v28 = vpack.c.bf16 %v2047_v24, %v2047_v24 }
 0x31e   :  { %v2149_v29 = vpop.eup %2148 }
 0x31f   :  { %v496_v30 = vmul.f32 %v2149_v29, %v2135_v54  ;;  %v481_v32 = vpop.xlane.xlu1 %480  ;;  %v595_v33 = vsel %vm517_vm2, %v510_v28, 0  ;;  %v614_v34 = vsel %vm517_vm2, %v511_v27, 0  ;;  %v744_v54 = vsel %vm517_vm2, %v1899_v52, 0 }
 0x320   :  { %2150 = vrcp.f32 %v481_v32  ;;  %v530_v35 = vpop.f32.mrf.mxu2  ;;  %604 = vmatpush.bf16.msrb.mxu2 %v595_v33  ;;  %623 = vmatpush.bf16.msrb.mxu3 %v614_v34  ;;  %v2453_v34 = vld [vmem:[%s2731_s1] sm:$0xff] }
 0x321   :  { %v504_v39 = vpack.c.bf16 %v496_v30, %v496_v30  ;;  %753 = vmatpush.bf16.msrb.mxu1 %v744_v54  ;;  %v2205_v30 = vmov 32.0  }
 0x322   :  { %2152 = vrcp.f32 %v2205_v30 }
 0x323   :  { %1890 = vmatmul.msk.bf16.vlgmr.msrb.gmra.mxu2 %vm222_vm1, %v502_v36  ;;  %1891 = vmatmul.msk.bf16.vlgmr.msrb.gmra.mxu3 %vm222_vm1, %v503_v37  ;;  %v56_v36 = vld [vmem:[%s2732_s3 + $0x8] sm:$0xff] }
 0x324   :  { %1892 = vmatmul.msk.bf16.vlgmr.msra.gmra.mxu0 %vm222_vm1, %v504_v39  ;;  %705 = vmatpush.bf16.msra.mxu3 %v696_v43  ;;  %v1993_v39 = vld [vmem:[%s2730_s7 + $0x10] sm:$0xff] }
 0x325   :  { %685 = vmatpush.bf16.msra.mxu2 %v676_v49  ;;  %v2475_v43 = vld [vmem:[%s2731_s1 + $0x10] sm:$0xff] }
 0x326   :  { %v2151_v31 = vpop.eup %2150 }
 0x327   :  { %v497_v38 = vmul.f32 %v2151_v31, %v2137_v56 }
 0x328   :  { %v532_v40 = vpop.f32.mrf.mxu2  ;;  %v2153_v32 = vpop.eup %2152 }
 0x329   :  { %v505_v41 = vpack.c.bf16 %v497_v38, %v497_v38  ;;  %v774_v33 = vmul.f32 32.0, %v2153_v32  ;;  %vm778_vm3 = vweird.f32 %v2153_v32 }
 0x32b   :  { %1893 = vmatmul.msk.bf16.vlgmr.msra.gmra.mxu1 %vm222_vm1, %v505_v41  ;;  %v775_v37 = vsub.f32 1.0, %v774_v33 }
 0x32d   :  { %v776_v41 = vmul.f32 %v2153_v32, %v775_v37 }
 0x32f   :  { %v777_v42 = vadd.f32 %v2153_v32, %v776_v41 }
 0x35f   :  { %v549_v44 = vpop.f32.mrf.mxu3 }
 0x360   :  { %v667_v46 = vpack.c.bf16 %v549_v44, %v530_v35  ;;  %v55_v35 = vld [vmem:[%s2732_s3] sm:$0xff]  ;;  %v2477_v44 = vsel %vm778_vm3, %v2153_v32, %v777_v42 }
 0x361   :  { %v861_v31 = vadd.f32 %v55_v35, %v2453_v34 }
 0x362   :  { %1896 = vmatmul.msk.bf16.vlgmr.msra.gmra.mxu3 %vm222_vm1, %v667_v46  ;;  %v2482_v46 = vld [vmem:[%s2731_s1 + $0x18] sm:$0xff] }
 0x363   :  { %v864_v52 = vadd.f32 %v58_v48, %v2482_v46 }
 0x367   :  { %v551_v47 = vpop.f32.mrf.mxu3 }
 0x368   :  { %v57_v47 = vld [vmem:[%s2732_s3 + $0x10] sm:$0xff] }
 0x369   :  { %v863_v51 = vadd.f32 %v57_v47, %v2475_v43 }
 0x388   :  { %v568_v53 = vpop.f32.mrf.mxu0 }
 0x390   :  { %v570_v55 = vpop.f32.mrf.mxu0  ;;  %v587_v56 = vpop.f32.mrf.mxu1 }
 0x391   :  { %v669_v57 = vpack.c.bf16 %v587_v56, %v568_v53  ;;  %v866_v55 = vpack.c.bf16 %v864_v52, %v863_v51 }
 0x393   :  { %1895 = vmatmul.msk.bf16.vlgmr.msra.gmra.mxu2 %vm222_vm1, %v669_v57 }
 0x398   :  { %v589_v58 = vpop.f32.mrf.mxu1 }
 0x3a1   :  { %v644_v59 = vpop.f32.mrf.mxu0 }
 0x3a6   :  { %v606_v60 = vpop.f32.mrf.mxu2  ;;  %v625_v61 = vpop.f32.mrf.mxu3 }
 0x3a7   :  { %v712_v62 = vpack.c.bf16 %v625_v61, %v606_v60 }
 0x3a8   :  { %v663_v63 = vpop.f32.mrf.mxu1 }
 0x3a9   :  { %v646_v0 = vpop.f32.mrf.mxu0  ;;  %v737_v5 = vpack.c.bf16 %v663_v63, %v644_v59  ;;  %1898 = vmatmul.msk.bf16.vlgmr.msrb.gmra.mxu0 %vm222_vm1, %v712_v62 }
 0x3aa   :  { %v1992_v0 = vld [vmem:[%s2730_s7 + $0x8] sm:$0xff] }
 0x3ab   :  { %1900 = vmatmul.msk.bf16.vlgmr.msrb.gmra.mxu1 %vm222_vm1, %v737_v5  ;;  %853 = vmatpush.bf16.msrb.mxu2 %v1992_v0 }
 0x3ae   :  { %v608_v6 = vpop.f32.mrf.mxu2  ;;  %v627_v7 = vpop.f32.mrf.mxu3 }
 0x3af   :  { %v1991_v6 = vld [vmem:[%s2730_s7] sm:$0xff] }
 0x3b0   :  { %v665_v45 = vpop.f32.mrf.mxu1  ;;  %854 = vmatpush.bf16.msrb.mxu2 %v1991_v6 }
 0x3e5   :  { %v707_v10 = vpop.f32.mrf.mxu3 }
 0x3ed   :  { %v709_v20 = vpop.f32.mrf.mxu3 }
 0x416   :  { %v687_v9 = vpop.f32.mrf.mxu2 }
 0x417   :  { %v708_v11 = vadd.f32 %v707_v10, %v687_v9 }
 0x41e   :  { %v689_v18 = vpop.f32.mrf.mxu2 }
 0x41f   :  { %v710_v21 = vadd.f32 %v709_v20, %v689_v18 }
 0x426   :  { %v730_v13 = vpop.f32.mrf.mxu0 }
 0x427   :  { %v735_v14 = vadd.f32 %v730_v13, %v708_v11  ;;  %v872_v13 = vperm.slane %v2309_v8, 4 }
 0x428   :  { %v755_v16 = vpop.f32.mrf.mxu1 }
 0x429   :  { %v760_v17 = vadd.f32 %v755_v16, %v735_v14 }
 0x42b   :  { %v763_v19 = vadd.f32 %v762_v15, %v760_v17 }
 0x42d   :  { %v765_v22 = vadd.f32 %v763_v19, %v2282_v1  ;;  %v1994_v1 = vld [vmem:[%s2730_s7 + $0x18] sm:$0xff] }
 0x42e   :  { %v732_v23 = vpop.f32.mrf.mxu0  ;;  %897 = vmatpush.bf16.msrb.mxu3 %v1994_v1 }
 0x42f   :  { %v736_v12 = vadd.f32 %v732_v23, %v710_v21  ;;  %v767_v24 = vsel %vm78_vm0, %v765_v22, 0.0 }
 0x430   :  { %v757_v25 = vpop.f32.mrf.mxu1  ;;  %768 = vadd.xlane.f32.xlu1 %v767_v24 }
 0x431   :  { %v761_v26 = vadd.f32 %v757_v25, %v736_v12 }
 0x432   :  { %898 = vmatpush.bf16.msrb.mxu3 %v1993_v39 }
 0x433   :  { %v764_v27 = vadd.f32 %v762_v15, %v761_v26  ;;  %v2517_v26 = vld [vmem:[%s2727_s12 + $0x8] sm:$0x7f] }
 0x434   :  { %v818_v32 = vperm.slane %v2517_v26, 1 }
 0x435   :  { %v766_v28 = vadd.f32 %v764_v27, %v2287_v2  ;;  %v2458_v2 = vld [vmem:[%s2731_s1 + $0x8] sm:$0xff] }
 0x436   :  { %v862_v38 = vadd.f32 %v56_v36, %v2458_v2 }
 0x437   :  { %v770_v29 = vsel %vm78_vm0, %v766_v28, 0.0 }
 0x438   :  { %771 = vadd.xlane.f32.xlu0 %v770_v29  ;;  %v865_v40 = vpack.c.bf16 %v862_v38, %v861_v31  ;;  %v821_v31 = vperm.slane %v2517_v26, 2 }
 0x43a   :  { %1922 = vmatmul.msk.bf16.vlgmr.msrb.gmra.mxu3 %vm78_vm0, %v865_v40 }
 0x44a   :  { %1923 = vmatmul.msk.bf16.gmra.mxu3 %vm78_vm0, %v866_v55 }
 0x4a3   :  { %v769_v49 = vpop.xlane.xlu1 %768 }
 0x4a4   :  { %v780_v50 = vmul.f32 %v2477_v44, %v769_v49 }
 0x4a6   :  { %v782_v53 = vsub.f32 %v765_v22, %v780_v50 }
 0x4a8   :  { %v784_v54 = vmul.f32 %v782_v53, %v782_v53 }
 0x4aa   :  { %v786_v56 = vsel %vm78_vm0, %v784_v54, 0.0 }
 0x4ab   :  { %v772_v57 = vpop.xlane.xlu0 %771  ;;  %787 = vadd.xlane.f32.xlu2 %v786_v56 }
 0x4ac   :  { %v781_v58 = vmul.f32 %v2477_v44, %v772_v57 }
 0x4ae   :  { %v783_v59 = vsub.f32 %v766_v28, %v781_v58 }
 0x4b0   :  { %v785_v60 = vmul.f32 %v783_v59, %v783_v59 }
 0x4b2   :  { %v789_v61 = vsel %vm78_vm0, %v785_v60, 0.0 }
 0x4b3   :  { %790 = vadd.xlane.f32.xlu1 %v789_v61  ;;  %v831_v61 = vperm.slane %v2309_v8, 3  ;;  %v1995_v8 = vld [vmem:[%s2730_s7 + $0x20] sm:$0xff] }
 0x4bd   :  { %v900_v9 = vpop.f32.mrf.mxu3 }
 0x4be   :  { %v2506_v15 = vadd.f32 %v900_v9, %v872_v13 }
 0x4c0   :  { %v1063_v19 = vpack.c.bf16 %v2506_v15, %v2506_v15 }
 0x4c2   :  { %v1081_v25 = vunpack.c.l.b16 %v1063_v19 }
 0x4c5   :  { %v902_v18 = vpop.f32.mrf.mxu3 }
 0x4c6   :  { %v2510_v21 = vadd.f32 %v902_v18, %v872_v13 }
 0x4c8   :  { %v1064_v24 = vpack.c.bf16 %v2510_v21, %v2510_v21  ;;  %v2069_v56 = vpack.i.bf16 %v2510_v21, %v2506_v15 }
 0x4ca   :  { %v1082_v29 = vunpack.c.l.b16 %v1064_v24 }
 0x4cc   :  { %v1083_v35 = vpack.c.b16 %v1082_v29, %v1081_v25 }
 0x4cd   :  { %v905_v1 = vpop.f32.mrf.mxu3 }
 0x4ce   :  { %v1088_v37 = vsel %vm222_vm1, %v1083_v35, 0  ;;  %v906_v42 = vadd.f32 %v905_v1, %v872_v13 }
 0x4cf   :  { %1097 = vmatpush.bf16.xpose.msra.mxu1 %v1088_v37 }
 0x4d0   :  { %v1065_v57 = vpack.c.bf16 %v906_v42, %v906_v42 }
 0x4d5   :  { %v907_v49 = vpop.f32.mrf.mxu3 }
 0x4d6   :  { %v908_v50 = vadd.f32 %v907_v49, %v872_v13 }
 0x4d8   :  { %v2054_v52 = vpack.i.bf16 %v908_v50, %v906_v42  ;;  %v1066_v58 = vpack.c.bf16 %v908_v50, %v908_v50 }
 0x4da   :  { %2055 = vrot.lane.b32.xlu1 %v2054_v52, %s2203_s22  ;;  %2065 = vrot.lane.b32.xlu2 %v2054_v52, %s2204_s23 }
 0x4e2   :  { %2070 = vrot.lane.b32.xlu1 %v2069_v56, %s2202_s21  ;;  %997 = vrot.lane.b32.xlu2 %v908_v50, %s2202_s21 }
 0x51e   :  { %v788_v62 = vpop.xlane.xlu2 %787 }
 0x51f   :  { %v792_v63 = vmul.f32 %v788_v62, %v2477_v44 }
 0x521   :  { %v794_v5 = vadd.f32 1e-05, %v792_v63 }
 0x523   :  { %2154 = vrsqrt.f32 %v794_v5  ;;  %vm802_vm5 = vweird.f32 %v794_v5 }
 0x526   :  { %v791_v7 = vpop.xlane.xlu1 %790 }
 0x527   :  { %v793_v45 = vmul.f32 %v791_v7, %v2477_v44 }
 0x529   :  { %v2155_v10 = vpop.eup %2154  ;;  %v795_v11 = vadd.f32 1e-05, %v793_v45  ;;  %v1996_v45 = vld [vmem:[%s2730_s7 + $0x28] sm:$0xff] }
 0x52a   :  { %v797_v14 = vmul.f32 %v2155_v10, %v794_v5  ;;  %vm803_vm4 = vweird.f32 %v2155_v10  ;;  %942 = vmatpush.bf16.msra.mxu0 %v1996_v45 }
 0x52b   :  { %2156 = vrsqrt.f32 %v795_v11  ;;  %vm804_vm6 = vmor %vm802_vm5, %vm803_vm4  ;;  %vm812_vm8 = vweird.f32 %v795_v11 }
 0x52c   :  { %v798_v16 = vmul.f32 %v2155_v10, %v797_v14 }
 0x52e   :  { %v799_v17 = vmul.f32 0.5, %v798_v16  ;;  %943 = vmatpush.bf16.msra.mxu0 %v1995_v8 }
 0x530   :  { %v800_v20 = vsub.f32 1.5, %v799_v17 }
 0x531   :  { %v2157_v22 = vpop.eup %2156 }
 0x532   :  { %v801_v23 = vmul.f32 %v2155_v10, %v800_v20  ;;  %v807_v12 = vmul.f32 %v2157_v22, %v795_v11  ;;  %vm813_vm7 = vweird.f32 %v2157_v22 }
 0x533   :  { %vm814_vm9 = vmor %vm812_vm8, %vm813_vm7 }
 0x534   :  { %v805_v27 = vsel %vm804_vm6, %v2155_v10, %v801_v23  ;;  %v808_v28 = vmul.f32 %v2157_v22, %v807_v12  ;;  %v2066_v6 = vpop.permute.xlu2 %2065 }
 0x535   :  { %v816_v33 = vmul.f32 %v805_v27, %v782_v53  ;;  %v2068_v9 = vunpack.i.h.bf16 %v2066_v6  ;;  %v2067_v10 = vunpack.i.l.bf16 %v2066_v6 }
 0x536   :  { %v809_v30 = vmul.f32 0.5, %v808_v28 }
 0x537   :  { %v819_v38 = vmul.f32 %v818_v32, %v816_v33  ;;  %v1078_v16 = vpack.c.bf16 %v2068_v9, %v2068_v9  ;;  %v1077_v17 = vpack.c.bf16 %v2067_v10, %v2067_v10 }
 0x538   :  { %v810_v36 = vsub.f32 1.5, %v809_v30 }
 0x539   :  { %v2522_v47 = vadd.f32 %v821_v31, %v819_v38  ;;  %v1250_v23 = vunpack.c.l.b16 %v1078_v16  ;;  %v1249_v12 = vunpack.c.l.b16 %v1077_v17 }
 0x53a   :  { %v811_v39 = vmul.f32 %v2157_v22, %v810_v36 }
 0x53b   :  { %v824_v53 = vadd.f32 %v2522_v47, %v2292_v3  ;;  %v1105_v3 = vunpack.c.l.b16 %v1065_v57  ;;  %v1251_v30 = vpack.c.b16 %v1250_v23, %v1249_v12 }
 0x53c   :  { %v815_v40 = vsel %vm814_vm9, %v2157_v22, %v811_v39  ;;  %v910_v22 = vpack.c.bf16 %v2458_v2, %v2453_v34 }
 0x53d   :  { %v817_v41 = vmul.f32 %v815_v40, %v783_v59  ;;  %v1106_v59 = vunpack.c.l.b16 %v1066_v58  ;;  %v911_v40 = vpack.c.bf16 %v2482_v46, %v2475_v43 }
 0x53e   :  { %1936 = vmatmul.msk.bf16.vlgmr.msra.gmra.mxu0 %vm78_vm0, %v910_v22 }
 0x53f   :  { %v820_v48 = vmul.f32 %v818_v32, %v817_v41  ;;  %v1107_v60 = vpack.c.b16 %v1106_v59, %v1105_v3 }
 0x541   :  { %v2524_v51 = vadd.f32 %v821_v31, %v820_v48  ;;  %v998_v48 = vpop.permute.xlu2 %997 }
 0x543   :  { %v825_v54 = vadd.f32 %v2524_v51, %v2297_v4  ;;  %v1112_v4 = vsel %vm222_vm1, %v1107_v60, 0 }
 0x544   :  { %1121 = vmatpush.bf16.xpose.msra.mxu2 %v1112_v4 }
 0x545   :  { %v826_v55 = vpack.c.bf16 %v825_v54, %v824_v53 }
 0x547   :  { %1909 = vmatmul.msk.bf16.vlgmr.msrb.gmra.mxu2 %vm78_vm0, %v826_v55  ;;  %v1074_v55 = vpack.c.bf16 %v998_v48, %v998_v48 }
 0x54c   :  { %v2056_v7 = vpop.permute.xlu1 %2055 }
 0x54d   :  { %v2058_v11 = vunpack.i.h.bf16 %v2056_v7  ;;  %v2057_v13 = vunpack.i.l.bf16 %v2056_v7 }
 0x54e   :  { %1937 = vmatmul.msk.bf16.gmra.mxu0 %vm78_vm0, %v911_v40 }
 0x54f   :  { %v1070_v18 = vpack.c.bf16 %v2058_v11, %v2058_v11  ;;  %v1069_v19 = vpack.c.bf16 %v2057_v13, %v2057_v13 }
 0x551   :  { %v1154_v24 = vunpack.c.l.b16 %v1070_v18  ;;  %v1153_v25 = vunpack.c.l.b16 %v1069_v19 }
 0x553   :  { %v1155_v32 = vpack.c.b16 %v1154_v24, %v1153_v25 }
 0x554   :  { %v2071_v33 = vpop.permute.xlu1 %2070 }
 0x555   :  { %v2073_v1 = vunpack.i.h.bf16 %v2071_v33  ;;  %v2072_v34 = vunpack.i.l.bf16 %v2071_v33  ;;  %v1160_v2 = vsel %vm222_vm1, %v1155_v32, 0  ;;  %v2583_v32 = vld [vmem:[%s2727_s12] sm:$0xff] }
 0x556   :  { %1169 = vmatpush.bf16.xpose.msrb.mxu2 %v1160_v2  ;;  %v917_v33 = vperm.slane %v2583_v32, 5 }
 0x557   :  { %v1072_v35 = vpack.c.bf16 %v2073_v1, %v2073_v1  ;;  %v1071_v36 = vpack.c.bf16 %v2072_v34, %v2072_v34 }
 0x559   :  { %v1178_v37 = vunpack.c.l.b16 %v1072_v35  ;;  %v1177_v39 = vunpack.c.l.b16 %v1071_v36 }
 0x55b   :  { %v1179_v31 = vpack.c.b16 %v1178_v37, %v1177_v39 }
 0x55d   :  { %v1184_v38 = vsel %vm222_vm1, %v1179_v31, 0 }
 0x55e   :  { %1193 = vmatpush.bf16.xpose.msra.mxu3 %v1184_v38 }
 0x5ca   :  { %v856_v62 = vpop.f32.mrf.mxu2 }
 0x5cb   :  { %v857_v63 = vadd.f32 %v856_v62, %v831_v61 }
 0x5cd   :  { %v1055_v0 = vpack.c.bf16 %v857_v63, %v857_v63  ;;  %v2059_v5 = vpack.i.bf16 %v857_v63, %v2510_v21  ;;  %v2084_v29 = vpack.i.bf16 %v906_v42, %v857_v63 }
 0x5cf   :  { %2060 = vrot.lane.b32.xlu0 %v2059_v5, %s2203_s22  ;;  %1938 = vmatmul.msk.bf16.vlgmr.msra.gmra.mxu1 %vm222_vm1, %v1055_v0 }
 0x5d2   :  { %v858_v14 = vpop.f32.mrf.mxu2 }
 0x5d3   :  { %v859_v20 = vadd.f32 %v858_v14, %v831_v61  ;;  %v1202_v61 = vunpack.c.l.b16 %v1074_v55 }
 0x5d5   :  { %v1056_v27 = vpack.c.bf16 %v859_v20, %v859_v20  ;;  %v2074_v28 = vpack.i.bf16 %v2506_v15, %v859_v20  ;;  %v1256_v15 = vsel %vm222_vm1, %v1251_v30, 0  ;;  %v945_v30 = vpop.f32.mrf.mxu0 }
 0x5d6   :  { %v946_v34 = vadd.f32 %v945_v30, %v917_v33 }
 0x5d7   :  { %2075 = vrot.lane.b32.xlu1 %v2074_v28, %s2203_s22  ;;  %1939 = vmatmul.msk.bf16.vlgmr.msra.gmra.mxu2 %vm222_vm1, %v1056_v27 }
 0x5d8   :  { %2085 = vrot.lane.b32.xlu0 %v2084_v29, %s2202_s21  ;;  %1265 = vmatpush.bf16.xpose.msra.mxu2 %v1256_v15  ;;  %v1368_v15 = vpack.c.bf16 %v946_v34, %v946_v34 }
 0x5da   :  { %v1386_v36 = vunpack.c.l.b16 %v1368_v15 }
 0x5dd   :  { %v947_v1 = vpop.f32.mrf.mxu0 }
 0x5de   :  { %v948_v2 = vadd.f32 %v947_v1, %v917_v33 }
 0x5df   :  { %2080 = vrot.lane.b32.xlu1 %v2074_v28, %s2204_s23 }
 0x5e0   :  { %965 = vrot.lane.b32.xlu0 %v859_v20, %s2202_s21  ;;  %v1369_v35 = vpack.c.bf16 %v948_v2, %v948_v2 }
 0x5e2   :  { %v1387_v37 = vunpack.c.l.b16 %v1369_v35 }
 0x5e4   :  { %v1388_v39 = vpack.c.b16 %v1387_v37, %v1386_v36 }
 0x5e5   :  { %v950_v31 = vpop.f32.mrf.mxu0 }
 0x5e6   :  { %1400 = vmatpush.bf16.msrb.mxu3 %v1388_v39  ;;  %v951_v38 = vadd.f32 %v950_v31, %v917_v33 }
 0x5e7   :  { %1005 = vrot.lane.b32.xlu1 %v2510_v21, %s2204_s23 }
 0x5e8   :  { %v1370_v40 = vpack.c.bf16 %v951_v38, %v951_v38 }
 0x5ea   :  { %v1408_v48 = vunpack.c.l.b16 %v1370_v40 }
 0x5ef   :  { %969 = vrot.lane.b32.xlu1 %v857_v63, %s2204_s23 }
 0x641   :  { %v2061_v41 = vpop.permute.xlu0 %2060 }
 0x642   :  { %v2062_v42 = vunpack.i.l.bf16 %v2061_v41  ;;  %v2063_v45 = vunpack.i.h.bf16 %v2061_v41  ;;  %v952_v41 = vpop.f32.mrf.mxu0 }
 0x644   :  { %v1068_v50 = vpack.c.bf16 %v2062_v42, %v2062_v42  ;;  %v1057_v13 = vpack.c.bf16 %v2063_v45, %v2063_v45  ;;  %v953_v42 = vadd.f32 %v952_v41, %v917_v33 }
 0x646   :  { %v1130_v60 = vunpack.c.l.b16 %v1068_v50  ;;  %v2586_v50 = vpack.i.bf16 %v953_v42, %v951_v38 }
 0x649   :  { %v2076_v49 = vpop.permute.xlu1 %2075 }
 0x64a   :  { %v2086_v52 = vpop.permute.xlu0 %2085  ;;  %v2078_v53 = vunpack.i.h.bf16 %v2076_v49  ;;  %v2077_v54 = vunpack.i.l.bf16 %v2076_v49  ;;  %v1371_v49 = vpack.c.bf16 %v953_v42, %v953_v42 }
 0x64b   :  { %v2088_v56 = vunpack.i.h.bf16 %v2086_v52  ;;  %v2087_v57 = vunpack.i.l.bf16 %v2086_v52 }
 0x64c   :  { %v1067_v21 = vpack.c.bf16 %v2078_v53, %v2078_v53  ;;  %v1058_v58 = vpack.c.bf16 %v2077_v54, %v2077_v54  ;;  %v2566_v3 = vpop.f32.mrf.mxu1  ;;  %v1409_v52 = vunpack.c.l.b16 %v1371_v49 }
 0x64d   :  { %v1073_v59 = vpack.c.bf16 %v2088_v56, %v2088_v56  ;;  %v1059_v43 = vpack.c.bf16 %v2087_v57, %v2087_v57  ;;  %v1272_v46 = vsel %vm1271_vm10, %v2566_v3, -inf }
 0x64e   :  { %v1129_v4 = vunpack.c.l.b16 %v1067_v21  ;;  %1273 = vmax.xlane.f32.xlu1 %v1272_v46  ;;  %1941 = vmatmul.msk.bf16.vlgmr.msrb.gmra.mxu2 %vm222_vm1, %v1058_v58  ;;  %v1410_v53 = vpack.c.b16 %v1409_v52, %v1408_v48 }
 0x64f   :  { %v1201_v62 = vunpack.c.l.b16 %v1073_v59  ;;  %1942 = vmatmul.msk.bf16.vlgmr.msra.gmra.mxu3 %vm222_vm1, %v1059_v43 }
 0x650   :  { %v1131_v63 = vpack.c.b16 %v1130_v60, %v1129_v4 }
 0x651   :  { %v1203_v0 = vpack.c.b16 %v1202_v61, %v1201_v62  ;;  %v2081_v5 = vpop.permute.xlu1 %2080 }
 0x652   :  { %v1136_v6 = vsel %vm222_vm1, %v1131_v63, 0  ;;  %v2083_v9 = vunpack.i.h.bf16 %v2081_v5  ;;  %v966_v11 = vpop.permute.xlu0 %965  ;;  %v2082_v14 = vunpack.i.l.bf16 %v2081_v5 }
 0x653   :  { %1145 = vmatpush.bf16.xpose.msrb.mxu1 %v1136_v6  ;;  %v1208_v7 = vsel %vm222_vm1, %v1203_v0, 0  ;;  %v1060_v16 = vpack.c.bf16 %v966_v11, %v966_v11 }
 0x654   :  { %1217 = vmatpush.bf16.xpose.msrb.mxu0 %v1208_v7  ;;  %v1101_v10 = vpop.f32.mrf.mxu1  ;;  %v1075_v8 = vpack.c.bf16 %v2083_v9, %v2083_v9  ;;  %v1062_v23 = vpack.c.bf16 %v2082_v14, %v2082_v14 }
 0x656   :  { %v1225_v22 = vunpack.c.l.b16 %v1075_v8 }
 0x659   :  { %v1006_v17 = vpop.permute.xlu1 %1005 }
 0x65a   :  { %v1076_v18 = vpack.c.bf16 %v1006_v17, %v1006_v17  ;;  %v1123_v19 = vpop.f32.mrf.mxu2  ;;  %1940 = vmatmul.msk.bf16.vlgmr.msrb.gmra.mxu1 %vm222_vm1, %v1057_v13 }
 0x65b   :  { %1943 = vmatmul.msk.bf16.vlgmr.msrb.gmra.mxu0 %vm222_vm1, %v1060_v16  ;;  %v1275_v20 = vsel %vm1271_vm10, %v1123_v19, -inf  ;;  %v2604_v16 = vpack.i.bf16 %v948_v2, %v946_v34 }
 0x65c   :  { %v1226_v12 = vunpack.c.l.b16 %v1076_v18  ;;  %1276 = vmax.xlane.f32.xlu2 %v1275_v20  ;;  %1422 = vmatpush.bf16.msra.mxu0 %v1410_v53 }
 0x65e   :  { %v1227_v24 = vpack.c.b16 %v1226_v12, %v1225_v22  ;;  %1945 = vmatmul.msk.bf16.vlgmr.msra.gmra.mxu2 %vm222_vm1, %v1062_v23 }
 0x660   :  { %v1232_v25 = vsel %vm222_vm1, %v1227_v24, 0 }
 0x661   :  { %1241 = vmatpush.bf16.xpose.msra.mxu1 %v1232_v25  ;;  %v970_v28 = vpop.permute.xlu1 %969 }
 0x662   :  { %v1125_v27 = vpop.f32.mrf.mxu2  ;;  %v1061_v29 = vpack.c.bf16 %v970_v28, %v970_v28 }
 0x66a   :  { %1944 = vmatmul.msk.bf16.vlgmr.msra.gmra.mxu1 %vm222_vm1, %v1061_v29 }
 0x6c1   :  { %v1274_v54 = vpop.xlane.xlu1 %1273 }
 0x6c2   :  { %v1296_v55 = vsub.f32 %v2566_v3, %v1274_v54 }
 0x6c4   :  { %v1304_v58 = vmul.f32 1.442695, %v1296_v55 }
 0x6c6   :  { %2158 = vpow2.f32 %v1304_v58 }
 0x6cc   :  { %v2159_v0 = vpop.eup %2158 }
 0x6cd   :  { %v1320_v45 = vsel %vm1271_vm10, %v2159_v0, 0.0 }
 0x6cf   :  { %v1277_v59 = vpop.xlane.xlu2 %1276 }
 0x6d0   :  { %v1297_v43 = vsub.f32 %v1123_v19, %v1277_v59 }
 0x6d1   :  { %v2589_v56 = vpop.f32.mrf.mxu2 }
 0x6d2   :  { %v1195_v57 = vpop.f32.mrf.mxu3  ;;  %v1281_v21 = vsel %vm1271_vm10, %v2589_v56, -inf  ;;  %v1306_v63 = vmul.f32 1.442695, %v1297_v43 }
 0x6d3   :  { %1282 = vmax.xlane.f32.xlu2 %v1281_v21  ;;  %v1284_v7 = vsel %vm1271_vm10, %v1195_v57, -inf }
 0x6d4   :  { %2160 = vpow2.f32 %v1306_v63 }
 0x6d7   :  { %v1147_v46 = vpop.f32.mrf.mxu1 }
 0x6d8   :  { %v1219_v60 = vpop.f32.mrf.mxu0  ;;  %v1278_v4 = vsel %vm1271_vm10, %v1147_v46, -inf }
 0x6d9   :  { %v1287_v61 = vsel %vm1271_vm10, %v1219_v60, -inf  ;;  %1279 = vmax.xlane.f32.xlu0 %v1278_v4  ;;  %v1173_v62 = vpop.f32.mrf.mxu2 }
 0x6da   :  { %1288 = vmax.xlane.f32.xlu1 %v1287_v61  ;;  %v1197_v3 = vpop.f32.mrf.mxu3  ;;  %v2161_v10 = vpop.eup %2160 }
 0x6db   :  { %v1323_v13 = vsel %vm1271_vm10, %v2161_v10, 0.0 }
 0x6df   :  { %v1149_v5 = vpop.f32.mrf.mxu1 }
 0x6e0   :  { %v1221_v6 = vpop.f32.mrf.mxu0 }
 0x6e1   :  { %1285 = vmax.xlane.f32.xlu0 %v1284_v7  ;;  %v2597_v9 = vpop.f32.mrf.mxu2 }
 0x6e2   :  { %1321 = vadd.xlane.f32.xlu1 %v1320_v45  ;;  %v1293_v18 = vsel %vm1271_vm10, %v2597_v9, -inf }
 0x6e7   :  { %v2599_v11 = vpop.f32.mrf.mxu1 }
 0x6e8   :  { %v1290_v17 = vsel %vm1271_vm10, %v2599_v11, -inf }
 0x6e9   :  { %1324 = vadd.xlane.f32.xlu0 %v1323_v13  ;;  %v1269_v8 = vpop.f32.mrf.mxu2 }
 0x6eb   :  { %2090 = vrot.lane.b32.xlu2 %v2586_v50, %s2203_s22 }
 0x6ef   :  { %v1245_v14 = vpop.f32.mrf.mxu1 }
 0x6fb   :  { %2095 = vrot.lane.b32.xlu1 %v2604_v16, %s2203_s22 }
 0x714   :  { %1291 = vmax.xlane.f32.xlu2 %v1290_v17 }
 0x725   :  { %1294 = vmax.xlane.f32.xlu1 %v1293_v18 }
 0x72c   :  { %2100 = vrot.lane.b32.xlu2 %v2586_v50, %s2204_s23 }
 0x73e   :  { %2110 = vrot.lane.b32.xlu1 %v2604_v16, %s2204_s23 }
 0x746   :  { %v1283_v19 = vpop.xlane.xlu2 %1282 }
 0x747   :  { %v1299_v37 = vsub.f32 %v2589_v56, %v1283_v19 }
 0x749   :  { %v1310_v40 = vmul.f32 1.442695, %v1299_v37 }
 0x74c   :  { %v1280_v20 = vpop.xlane.xlu0 %1279 }
 0x74d   :  { %v1289_v22 = vpop.xlane.xlu1 %1288  ;;  %v1298_v23 = vsub.f32 %v1147_v46, %v1280_v20 }
 0x74e   :  { %v2091_v12 = vpop.permute.xlu2 %2090  ;;  %v1301_v35 = vsub.f32 %v1219_v60, %v1289_v22 }
 0x74f   :  { %v1308_v24 = vmul.f32 1.442695, %v1298_v23  ;;  %v2093_v25 = vunpack.i.h.bf16 %v2091_v12  ;;  %v2092_v27 = vunpack.i.l.bf16 %v2091_v12 }
 0x750   :  { %v1314_v38 = vmul.f32 1.442695, %v1301_v35 }
 0x751   :  { %2162 = vpow2.f32 %v1308_v24  ;;  %v1375_v28 = vpack.c.bf16 %v2093_v25, %v2093_v25  ;;  %v1374_v29 = vpack.c.bf16 %v2092_v27, %v2092_v27 }
 0x753   :  { %v1453_v30 = vunpack.c.l.b16 %v1375_v28  ;;  %v1452_v33 = vunpack.c.l.b16 %v1374_v29 }
 0x754   :  { %v1286_v1 = vpop.xlane.xlu0 %1285 }
 0x755   :  { %v1454_v34 = vpack.c.b16 %v1453_v30, %v1452_v33  ;;  %v1322_v2 = vpop.xlane.xlu1 %1321  ;;  %v1300_v15 = vsub.f32 %v1195_v57, %v1286_v1 }
 0x756   :  { %2164 = vrcp.f32 %v1322_v2 }
 0x757   :  { %v2616_v36 = vpop.eup %2162  ;;  %v1312_v39 = vmul.f32 1.442695, %v1300_v15  ;;  %1466 = vmatpush.bf16.msrb.mxu2 %v1454_v34 }
 0x758   :  { %v1326_v31 = vsel %vm1271_vm10, %v2616_v36, 0.0 }
 0x759   :  { %2166 = vpow2.f32 %v1312_v39  ;;  %1327 = vadd.xlane.f32.xlu0 %v1326_v31 }
 0x75c   :  { %v2165_v41 = vpop.eup %2164  ;;  %v1325_v42 = vpop.xlane.xlu0 %1324 }
 0x75d   :  { %v1352_v48 = vmul.f32 %v2165_v41, %v2159_v0  ;;  %2168 = vrcp.f32 %v1325_v42 }
 0x75e   :  { %2170 = vpow2.f32 %v1314_v38 }
 0x75f   :  { %v2621_v49 = vpop.eup %2166  ;;  %2172 = vpow2.f32 %v1310_v40  ;;  %v1360_v52 = vpack.c.bf16 %v1352_v48, %v1352_v48 }
 0x760   :  { %v1332_v53 = vsel %vm1271_vm10, %v2621_v49, 0.0 }
 0x761   :  { %1946 = vmatmul.msk.bf16.vlgmr.msrb.gmra.mxu3 %vm1271_vm10, %v1360_v52  ;;  %1333 = vadd.xlane.f32.xlu0 %v1332_v53 }
 0x763   :  { %v2169_v54 = vpop.eup %2168 }
 0x764   :  { %v2626_v55 = vpop.eup %2170  ;;  %v1353_v56 = vmul.f32 %v2169_v54, %v2161_v10 }
 0x765   :  { %v2173_v57 = vpop.eup %2172  ;;  %v1335_v58 = vsel %vm1271_vm10, %v2626_v55, 0.0 }
 0x766   :  { %v1361_v21 = vpack.c.bf16 %v1353_v56, %v1353_v56  ;;  %v1329_v59 = vsel %vm1271_vm10, %v2173_v57, 0.0 }
 0x768   :  { %1336 = vadd.xlane.f32.xlu1 %v1335_v58  ;;  %1947 = vmatmul.msk.bf16.vlgmr.msra.gmra.mxu0 %vm1271_vm10, %v1361_v21 }
 0x769   :  { %1330 = vadd.xlane.f32.xlu0 %v1329_v59 }
 0x76d   :  { %v2096_v43 = vpop.permute.xlu1 %2095 }
 0x76e   :  { %v2098_v46 = vunpack.i.h.bf16 %v2096_v43  ;;  %v2097_v60 = vunpack.i.l.bf16 %v2096_v43 }
 0x770   :  { %v1373_v4 = vpack.c.bf16 %v2098_v46, %v2098_v46  ;;  %v1372_v61 = vpack.c.bf16 %v2097_v60, %v2097_v60 }
 0x772   :  { %v1431_v62 = vunpack.c.l.b16 %v1373_v4  ;;  %v1430_v3 = vunpack.c.l.b16 %v1372_v61 }
 0x774   :  { %v1432_v63 = vpack.c.b16 %v1431_v62, %v1430_v3 }
 0x776   :  { %1444 = vmatpush.bf16.msrb.mxu1 %v1432_v63 }
 0x77d   :  { %2105 = vrot.lane.b32.xlu0 %v2604_v16, %s2202_s21 }
 0x787   :  { %v1292_v0 = vpop.xlane.xlu2 %1291 }
 0x788   :  { %v1302_v5 = vsub.f32 %v2599_v11, %v1292_v0 }
 0x78a   :  { %v1316_v6 = vmul.f32 1.442695, %v1302_v5 }
 0x78c   :  { %2174 = vpow2.f32 %v1316_v6 }
 0x78f   :  { %v2101_v7 = vpop.permute.xlu2 %2100 }
 0x790   :  { %v2103_v45 = vunpack.i.h.bf16 %v2101_v7  ;;  %v2102_v10 = vunpack.i.l.bf16 %v2101_v7 }
 0x792   :  { %v2175_v13 = vpop.eup %2174  ;;  %v1383_v8 = vpack.c.bf16 %v2103_v45, %v2103_v45  ;;  %v1382_v14 = vpack.c.bf16 %v2102_v10, %v2102_v10 }
 0x793   :  { %v1338_v17 = vsel %vm1271_vm10, %v2175_v13, 0.0 }
 0x794   :  { %v1541_v18 = vunpack.c.l.b16 %v1383_v8  ;;  %v1540_v19 = vunpack.c.l.b16 %v1382_v14  ;;  %1339 = vadd.xlane.f32.xlu2 %v1338_v17 }
 0x796   :  { %v1542_v20 = vpack.c.b16 %v1541_v18, %v1540_v19 }
 0x798   :  { %v1295_v22 = vpop.xlane.xlu1 %1294  ;;  %1554 = vmatpush.bf16.msra.mxu2 %v1542_v20 }
 0x799   :  { %v1303_v16 = vsub.f32 %v2597_v9, %v1295_v22 }
 0x79b   :  { %v1318_v23 = vmul.f32 1.442695, %v1303_v16 }
 0x79d   :  { %2176 = vpow2.f32 %v1318_v23  ;;  %v1954_v23 = vld [vmem:[%s2733_s8 + $0x4] sm:$0xf] }
 0x7a3   :  { %v2177_v11 = vpop.eup %2176 }
 0x7a4   :  { %v1341_v12 = vsel %vm1271_vm10, %v2177_v11, 0.0 }
 0x7a7   :  { %1342 = vadd.xlane.f32.xlu0 %v1341_v12 }
 0x7b0   :  { %v2111_v24 = vpop.permute.xlu1 %2110 }
 0x7b1   :  { %v2113_v25 = vunpack.i.h.bf16 %v2111_v24  ;;  %v2112_v27 = vunpack.i.l.bf16 %v2111_v24 }
 0x7b3   :  { %v1381_v28 = vpack.c.bf16 %v2113_v25, %v2113_v25  ;;  %v1380_v29 = vpack.c.bf16 %v2112_v27, %v2112_v27 }
 0x7b5   :  { %v1519_v30 = vunpack.c.l.b16 %v1381_v28  ;;  %v1518_v33 = vunpack.c.l.b16 %v1380_v29 }
 0x7b7   :  { %v1520_v1 = vpack.c.b16 %v1519_v30, %v1518_v33  ;;  %v1959_v30 = vld [vmem:[%s2733_s8 + $0xc] sm:$0xf] }
 0x7b8   :  { %v1637_v33 = vsel %vm517_vm2, %v1959_v30, 0 }
 0x7b9   :  { %1532 = vmatpush.bf16.msra.mxu1 %v1520_v1 }
 0x7bb   :  { %2115 = vrot.lane.b32.xlu0 %v2586_v50, %s2202_s21 }
 0x7cc   :  { %v1328_v34 = vpop.xlane.xlu0 %1327 }
 0x7cd   :  { %2178 = vrcp.f32 %v1328_v34  ;;  %v1957_v34 = vld [vmem:[%s2733_s8 + $0x8] sm:$0xf] }
 0x7d3   :  { %v2179_v9 = vpop.eup %2178 }
 0x7d4   :  { %v1354_v2 = vmul.f32 %v2179_v9, %v2616_v36  ;;  %v1334_v15 = vpop.xlane.xlu0 %1333  ;;  %v1612_v9 = vsel %vm517_vm2, %v1957_v34, 0 }
 0x7d6   :  { %v1362_v35 = vpack.c.bf16 %v1354_v2, %v1354_v2 }
 0x7d8   :  { %1948 = vmatmul.msk.bf16.vlgmr.msrb.gmra.mxu1 %vm1271_vm10, %v1362_v35 }
 0x7d9   :  { %1621 = vmatpush.bf16.msrb.mxu1 %v1612_v9 }
 0x7dc   :  { %v1331_v37 = vpop.xlane.xlu0 %1330 }
 0x7dd   :  { %2180 = vrcp.f32 %v1331_v37 }
 0x7de   :  { %2182 = vrcp.f32 %v1334_v15 }
 0x7e3   :  { %v2181_v39 = vpop.eup %2180 }
 0x7e4   :  { %v1355_v31 = vmul.f32 %v2181_v39, %v2173_v57  ;;  %v1402_v38 = vpop.f32.mrf.mxu3  ;;  %v2183_v54 = vpop.eup %2182 }
 0x7e5   :  { %v1424_v40 = vpop.f32.mrf.mxu0  ;;  %v1356_v43 = vmul.f32 %v2183_v54, %v2621_v49  ;;  %v1337_v49 = vpop.xlane.xlu1 %1336 }
 0x7e6   :  { %v1363_v41 = vpack.c.bf16 %v1355_v31, %v1355_v31  ;;  %v1560_v42 = vpack.c.bf16 %v1424_v40, %v1402_v38 }
 0x7e7   :  { %v1364_v46 = vpack.c.bf16 %v1356_v43, %v1356_v43 }
 0x7e8   :  { %1949 = vmatmul.msk.bf16.vlgmr.msrb.gmra.mxu2 %vm1271_vm10, %v1363_v41 }
 0x7e9   :  { %1646 = vmatpush.bf16.msrb.mxu2 %v1637_v33  ;;  %v1704_v33 = vperm.slane %v2517_v26, 3 }
 0x7ec   :  { %v1404_v50 = vpop.f32.mrf.mxu3 }
 0x7ed   :  { %v1426_v48 = vpop.f32.mrf.mxu0 }
 0x7ef   :  { %v2106_v52 = vpop.permute.xlu0 %2105 }
 0x7f0   :  { %v2108_v53 = vunpack.i.h.bf16 %v2106_v52  ;;  %v2107_v36 = vunpack.i.l.bf16 %v2106_v52 }
 0x7f2   :  { %v1377_v56 = vpack.c.bf16 %v2108_v53, %v2108_v53  ;;  %v1376_v21 = vpack.c.bf16 %v2107_v36, %v2107_v36  ;;  %v1655_v53 = vperm.slane %v2583_v32, 7 }
 0x7f4   :  { %v1475_v58 = vunpack.c.l.b16 %v1377_v56  ;;  %v1474_v59 = vunpack.c.l.b16 %v1376_v21 }
 0x7f6   :  { %v1476_v57 = vpack.c.b16 %v1475_v58, %v1474_v59 }
 0x7f8   :  { %1488 = vmatpush.bf16.msra.mxu3 %v1476_v57 }
 0x7fb   :  { %1950 = vmatmul.msk.bf16.vlgmr.msra.gmra.mxu3 %vm1271_vm10, %v1364_v46 }
 0x807   :  { %v1340_v60 = vpop.xlane.xlu2 %1339 }
 0x808   :  { %2184 = vrcp.f32 %v1340_v60 }
 0x80e   :  { %v2185_v4 = vpop.eup %2184 }
 0x80f   :  { %v1358_v61 = vmul.f32 %v2185_v4, %v2175_v13  ;;  %v1561_v13 = vld [vmem:[%s2733_s8] sm:$0xf] }
 0x810   :  { %v1589_v22 = vsel %vm517_vm2, %v1561_v13, 0 }
 0x811   :  { %v1366_v62 = vpack.c.bf16 %v1358_v61, %v1358_v61 }
 0x813   :  { %1952 = vmatmul.msk.bf16.vlgmr.msra.gmra.mxu1 %vm1271_vm10, %v1366_v62 }
 0x81a   :  { %v1343_v3 = vpop.xlane.xlu0 %1342 }
 0x81b   :  { %2186 = vrcp.f32 %v1343_v3 }
 0x81c   :  { %2188 = vrcp.f32 %v1337_v49 }
 0x821   :  { %v2187_v63 = vpop.eup %2186 }
 0x822   :  { %v1359_v0 = vmul.f32 %v2187_v63, %v2177_v11  ;;  %v2189_v10 = vpop.eup %2188  ;;  %v1569_v11 = vsel %vm517_vm2, %v1954_v23, 0  ;;  %vm1784_vm2 = vcmask 523264  }
 0x823   :  { %v1357_v19 = vmul.f32 %v2189_v10, %v2626_v55  ;;  %1578 = vmatpush.bf16.msrb.mxu3 %v1569_v11 }
 0x824   :  { %v1367_v5 = vpack.c.bf16 %v1359_v0, %v1359_v0 }
 0x825   :  { %v1365_v16 = vpack.c.bf16 %v1357_v19, %v1357_v19 }
 0x826   :  { %1953 = vmatmul.msk.bf16.vlgmr.msra.gmra.mxu2 %vm1271_vm10, %v1367_v5 }
 0x82d   :  { %v2116_v6 = vpop.permute.xlu0 %2115 }
 0x82e   :  { %v2118_v7 = vunpack.i.h.bf16 %v2116_v6  ;;  %v2117_v45 = vunpack.i.l.bf16 %v2116_v6 }
 0x830   :  { %v1379_v8 = vpack.c.bf16 %v2118_v7, %v2118_v7  ;;  %v1378_v14 = vpack.c.bf16 %v2117_v45, %v2117_v45 }
 0x832   :  { %v1497_v17 = vunpack.c.l.b16 %v1379_v8  ;;  %v1496_v18 = vunpack.c.l.b16 %v1378_v14 }
 0x834   :  { %v1498_v20 = vpack.c.b16 %v1497_v17, %v1496_v18  ;;  %v1997_v17 = vld [vmem:[%s2735_s9] sm:$0xff] }
 0x836   :  { %1510 = vmatpush.bf16.msrb.mxu0 %v1498_v20 }
 0x839   :  { %1951 = vmatmul.msk.bf16.vlgmr.msrb.gmra.mxu0 %vm1271_vm10, %v1365_v16 }
 0x83a   :  { %1598 = vmatpush.bf16.msra.mxu0 %v1589_v22 }
 0x849   :  { %1956 = vmatmul.msk.bf16.vlgmr.msra.gmra.mxu0 %vm222_vm1, %v1560_v42 }
 0x855   :  { %v1446_v12 = vpop.f32.mrf.mxu1 }
 0x85d   :  { %v1448_v24 = vpop.f32.mrf.mxu1 }
 0x86b   :  { %v1468_v55 = vpop.f32.mrf.mxu2 }
 0x86c   :  { %v1562_v25 = vpack.c.bf16 %v1468_v55, %v1446_v12 }
 0x86e   :  { %1955 = vmatmul.msk.bf16.vlgmr.msrb.gmra.mxu3 %vm222_vm1, %v1562_v25 }
 0x873   :  { %v1470_v27 = vpop.f32.mrf.mxu2 }
 0x87e   :  { %v1490_v28 = vpop.f32.mrf.mxu3 }
 0x886   :  { %v1492_v29 = vpop.f32.mrf.mxu3 }
 0x890   :  { %v1534_v1 = vpop.f32.mrf.mxu1 }
 0x898   :  { %v1536_v2 = vpop.f32.mrf.mxu1 }
 0x899   :  { %v1707_v2 = vperm.slane %v2517_v26, 4 }
 0x8a9   :  { %v1556_v15 = vpop.f32.mrf.mxu2 }
 0x8aa   :  { %v1630_v35 = vpack.c.bf16 %v1556_v15, %v1534_v1 }
 0x8ac   :  { %1960 = vmatmul.msk.bf16.vlgmr.msrb.gmra.mxu2 %vm222_vm1, %v1630_v35 }
 0x8b1   :  { %v1558_v37 = vpop.f32.mrf.mxu2 }
 0x8b6   :  { %v1512_v39 = vpop.f32.mrf.mxu0 }
 0x8b7   :  { %v1605_v31 = vpack.c.bf16 %v1512_v39, %v1490_v28 }
 0x8b9   :  { %1958 = vmatmul.msk.bf16.vlgmr.msrb.gmra.mxu1 %vm222_vm1, %v1605_v31 }
 0x8be   :  { %v1514_v38 = vpop.f32.mrf.mxu0 }
 0x8c6   :  { %v1600_v41 = vpop.f32.mrf.mxu0 }
 0x8ce   :  { %v1602_v21 = vpop.f32.mrf.mxu0 }
 0x8f1   :  { %v1580_v40 = vpop.f32.mrf.mxu3 }
 0x8f2   :  { %v1601_v42 = vadd.f32 %v1600_v41, %v1580_v40  ;;  %v2002_v40 = vld [vmem:[%s2736_s11 + $0x18] sm:$0xff]  ;;  %v2001_v41 = vld [vmem:[%s2736_s11 + $0x10] sm:$0xff] }
 0x8f3   :  { %1792 = vmatpush.bf16.msrb.mxu0 %v2002_v40 }
 0x8f7   :  { %1793 = vmatpush.bf16.msrb.mxu0 %v2001_v41 }
 0x8f9   :  { %v1582_v54 = vpop.f32.mrf.mxu3 }
 0x8fa   :  { %v1603_v58 = vadd.f32 %v1602_v21, %v1582_v54 }
 0x92f   :  { %v1648_v50 = vpop.f32.mrf.mxu2 }
 0x936   :  { %v1623_v48 = vpop.f32.mrf.mxu1 }
 0x937   :  { %v1628_v52 = vadd.f32 %v1623_v48, %v1601_v42  ;;  %v1650_v60 = vpop.f32.mrf.mxu2  ;;  %v2000_v42 = vld [vmem:[%s2736_s11 + $0x8] sm:$0xff] }
 0x938   :  { %1794 = vmatpush.bf16.msrb.mxu0 %v2000_v42 }
 0x939   :  { %v1653_v36 = vadd.f32 %v1648_v50, %v1628_v52  ;;  %v1999_v50 = vld [vmem:[%s2736_s11] sm:$0xff] }
 0x93a   :  { %v2119_v52 = vld [vmem:[%s2734_s10] ss:$0 sm:$0xff] }
 0x93b   :  { %v1656_v56 = vadd.f32 %v1655_v53, %v1653_v36 }
 0x93c   :  { %1795 = vmatpush.bf16.msrb.mxu0 %v1999_v50 }
 0x93d   :  { %v1658_v59 = vadd.f32 %v1656_v56, %v2522_v47 }
 0x93e   :  { %v1625_v43 = vpop.f32.mrf.mxu1 }
 0x93f   :  { %v1629_v57 = vadd.f32 %v1625_v43, %v1603_v58  ;;  %v1660_v46 = vsel %vm78_vm0, %v1658_v59, 0.0 }
 0x940   :  { %1661 = vadd.xlane.f32.xlu0 %v1660_v46 }
 0x941   :  { %v1654_v4 = vadd.f32 %v1650_v60, %v1629_v57 }
 0x943   :  { %v1657_v61 = vadd.f32 %v1655_v53, %v1654_v4 }
 0x945   :  { %v1659_v62 = vadd.f32 %v1657_v61, %v2524_v51  ;;  %v1998_v51 = vld [vmem:[%s2735_s9 + $0x8] sm:$0xff] }
 0x946   :  { %1740 = vmatpush.bf16.msra.mxu3 %v1998_v51 }
 0x947   :  { %v1663_v3 = vsel %vm78_vm0, %v1659_v62, 0.0 }
 0x948   :  { %1664 = vadd.xlane.f32.xlu2 %v1663_v3 }
 0x94a   :  { %1741 = vmatpush.bf16.msra.mxu3 %v1997_v17 }
 0x9b3   :  { %v1662_v32 = vpop.xlane.xlu0 %1661 }
 0x9b4   :  { %v1666_v63 = vmul.f32 %v1662_v32, %v2477_v44 }
 0x9b6   :  { %v1668_v0 = vsub.f32 %v1658_v59, %v1666_v63  ;;  %v1759_v59 = vperm.slane %v2517_v26, 0 }
 0x9b8   :  { %v1670_v5 = vmul.f32 %v1668_v0, %v1668_v0 }
 0x9ba   :  { %v1672_v47 = vsel %vm78_vm0, %v1670_v5, 0.0 }
 0x9bb   :  { %1673 = vadd.xlane.f32.xlu2 %v1672_v47  ;;  %v1665_v49 = vpop.xlane.xlu2 %1664 }
 0x9bc   :  { %v1667_v6 = vmul.f32 %v1665_v49, %v2477_v44 }
 0x9be   :  { %v1669_v7 = vsub.f32 %v1659_v62, %v1667_v6 }
 0x9c0   :  { %v1671_v45 = vmul.f32 %v1669_v7, %v1669_v7 }
 0x9c2   :  { %v1675_v10 = vsel %vm78_vm0, %v1671_v45, 0.0 }
 0x9c3   :  { %1676 = vadd.xlane.f32.xlu1 %v1675_v10 }
 0xa2e   :  { %v1674_v8 = vpop.xlane.xlu2 %1673 }
 0xa2f   :  { %v1678_v14 = vmul.f32 %v1674_v8, %v2477_v44 }
 0xa31   :  { %v1680_v13 = vadd.f32 1e-05, %v1678_v14 }
 0xa33   :  { %2190 = vrsqrt.f32 %v1680_v13  ;;  %vm1688_vm12 = vweird.f32 %v1680_v13 }
 0xa36   :  { %v1677_v18 = vpop.xlane.xlu1 %1676 }
 0xa37   :  { %v1679_v19 = vmul.f32 %v1677_v18, %v2477_v44 }
 0xa39   :  { %v2191_v20 = vpop.eup %2190  ;;  %v1681_v22 = vadd.f32 1e-05, %v1679_v19 }
 0xa3a   :  { %v1683_v16 = vmul.f32 %v2191_v20, %v1680_v13  ;;  %vm1689_vm11 = vweird.f32 %v2191_v20 }
 0xa3b   :  { %2192 = vrsqrt.f32 %v1681_v22  ;;  %vm1690_vm13 = vmor %vm1688_vm12, %vm1689_vm11  ;;  %vm1698_vm15 = vweird.f32 %v1681_v22 }
 0xa3c   :  { %v1684_v23 = vmul.f32 %v2191_v20, %v1683_v16 }
 0xa3e   :  { %v1685_v11 = vmul.f32 0.5, %v1684_v23 }
 0xa40   :  { %v1686_v12 = vsub.f32 1.5, %v1685_v11 }
 0xa41   :  { %v2193_v24 = vpop.eup %2192 }
 0xa42   :  { %v1687_v55 = vmul.f32 %v2191_v20, %v1686_v12  ;;  %v1693_v25 = vmul.f32 %v2193_v24, %v1681_v22  ;;  %vm1699_vm14 = vweird.f32 %v2193_v24 }
 0xa43   :  { %vm1700_vm1 = vmor %vm1698_vm15, %vm1699_vm14 }
 0xa44   :  { %v1694_v27 = vmul.f32 %v2193_v24, %v1693_v25  ;;  %v1691_v28 = vsel %vm1690_vm13, %v2191_v20, %v1687_v55 }
 0xa45   :  { %v1702_v1 = vmul.f32 %v1691_v28, %v1668_v0 }
 0xa46   :  { %v1695_v29 = vmul.f32 0.5, %v1694_v27 }
 0xa47   :  { %v1705_v15 = vmul.f32 %v1704_v33, %v1702_v1 }
 0xa48   :  { %v1696_v30 = vsub.f32 1.5, %v1695_v29 }
 0xa49   :  { %v1708_v39 = vadd.f32 %v1707_v2, %v1705_v15 }
 0xa4a   :  { %v1697_v34 = vmul.f32 %v2193_v24, %v1696_v30 }
 0xa4c   :  { %v1701_v9 = vsel %vm1700_vm1, %v2193_v24, %v1697_v34  ;;  %v2199_v24 = vld [vmem:[%s2727_s12 + $0x8] sm:$0x7f] }
 0xa4d   :  { %v1703_v35 = vmul.f32 %v1701_v9, %v1669_v7  ;;  %v1848_v55 = vperm.slane %v2199_v24, 5  ;;  %v1851_v27 = vperm.slane %v2199_v24, 6 }
 0xa4f   :  { %v1706_v37 = vmul.f32 %v1704_v33, %v1703_v35 }
 0xa51   :  { %v1709_v31 = vadd.f32 %v1707_v2, %v1706_v37 }
 0xa53   :  { %v1710_v38 = vpack.c.bf16 %v1709_v31, %v1708_v39 }
 0xa55   :  { %1969 = vmatmul.msk.bf16.vlgmr.msra.gmra.mxu3 %vm78_vm0, %v1710_v38 }
 0xad8   :  { %v1743_v48 = vpop.f32.mrf.mxu3 }
 0xad9   :  { %v1744_v53 = vadd.f32 %v2119_v52, %v1743_v48 }
 0xadb   :  { %v1748_v56 = vmax.f32 %v1744_v53, 0.0 }
 0xae0   :  { %v1745_v36 = vpop.f32.mrf.mxu3 }
 0xae1   :  { %v1746_v54 = vadd.f32 %v2119_v52, %v1745_v36 }
 0xae3   :  { %v1749_v21 = vmax.f32 %v1746_v54, 0.0 }
 0xae5   :  { %v1750_v58 = vpack.c.bf16 %v1749_v21, %v1748_v56 }
 0xae7   :  { %1986 = vmatmul.msk.bf16.vlgmr.msrb.gmra.mxu0 %vm1784_vm2, %v1750_v58 }
 0xb64   :  { %v1797_v43 = vpop.f32.mrf.mxu0 }
 0xb65   :  { %v1798_v57 = vadd.f32 %v1797_v43, %v1759_v59 }
 0xb67   :  { %v1802_v46 = vadd.f32 %v1798_v57, %v1708_v39 }
 0xb69   :  { %v1804_v60 = vsel %vm78_vm0, %v1802_v46, 0.0 }
 0xb6a   :  { %1805 = vadd.xlane.f32.xlu2 %v1804_v60 }
 0xb6c   :  { %v1799_v4 = vpop.f32.mrf.mxu0 }
 0xb6d   :  { %v1800_v61 = vadd.f32 %v1799_v4, %v1759_v59 }
 0xb6f   :  { %v1803_v62 = vadd.f32 %v1800_v61, %v1709_v31 }
 0xb71   :  { %v1807_v3 = vsel %vm78_vm0, %v1803_v62, 0.0 }
 0xb72   :  { %1808 = vadd.xlane.f32.xlu1 %v1807_v3 }
 0xbdd   :  { %v1806_v32 = vpop.xlane.xlu2 %1805 }
 0xbde   :  { %v1810_v63 = vmul.f32 %v1806_v32, %v2477_v44 }
 0xbe0   :  { %v1812_v0 = vsub.f32 %v1802_v46, %v1810_v63 }
 0xbe2   :  { %v1814_v5 = vmul.f32 %v1812_v0, %v1812_v0 }
 0xbe4   :  { %v1816_v47 = vsel %vm78_vm0, %v1814_v5, 0.0 }
 0xbe5   :  { %v1809_v26 = vpop.xlane.xlu1 %1808  ;;  %1817 = vadd.xlane.f32.xlu2 %v1816_v47 }
 0xbe6   :  { %v1811_v49 = vmul.f32 %v1809_v26, %v2477_v44 }
 0xbe8   :  { %v1813_v6 = vsub.f32 %v1803_v62, %v1811_v49 }
 0xbea   :  { %v1815_v7 = vmul.f32 %v1813_v6, %v1813_v6 }
 0xbec   :  { %v1819_v45 = vsel %vm78_vm0, %v1815_v7, 0.0 }
 0xbed   :  { %1820 = vadd.xlane.f32.xlu1 %v1819_v45 }
 0xc58   :  { %v1818_v10 = vpop.xlane.xlu2 %1817 }
 0xc59   :  { %v1822_v51 = vmul.f32 %v1818_v10, %v2477_v44 }
 0xc5b   :  { %v1824_v8 = vadd.f32 1e-05, %v1822_v51 }
 0xc5d   :  { %2194 = vrsqrt.f32 %v1824_v8  ;;  %vm1832_vm4 = vweird.f32 %v1824_v8 }
 0xc60   :  { %v1821_v14 = vpop.xlane.xlu1 %1820 }
 0xc61   :  { %v1823_v13 = vmul.f32 %v1821_v14, %v2477_v44 }
 0xc63   :  { %v2195_v17 = vpop.eup %2194  ;;  %v1825_v18 = vadd.f32 1e-05, %v1823_v13 }
 0xc64   :  { %v1827_v19 = vmul.f32 %v2195_v17, %v1824_v8  ;;  %vm1833_vm3 = vweird.f32 %v2195_v17 }
 0xc65   :  { %2196 = vrsqrt.f32 %v1825_v18  ;;  %vm1834_vm5 = vmor %vm1832_vm4, %vm1833_vm3  ;;  %vm1842_vm7 = vweird.f32 %v1825_v18 }
 0xc66   :  { %v1828_v20 = vmul.f32 %v2195_v17, %v1827_v19 }
 0xc68   :  { %v1829_v22 = vmul.f32 0.5, %v1828_v20 }
 0xc6a   :  { %v1830_v16 = vsub.f32 1.5, %v1829_v22 }
 0xc6b   :  { %v2197_v23 = vpop.eup %2196 }
 0xc6c   :  { %v1831_v11 = vmul.f32 %v2195_v17, %v1830_v16  ;;  %v1837_v12 = vmul.f32 %v2197_v23, %v1825_v18  ;;  %vm1843_vm6 = vweird.f32 %v2197_v23 }
 0xc6d   :  { %vm1844_vm8 = vmor %vm1842_vm7, %vm1843_vm6 }
 0xc6e   :  { %v1835_v25 = vsel %vm1834_vm5, %v2195_v17, %v1831_v11  ;;  %v1838_v44 = vmul.f32 %v2197_v23, %v1837_v12 }
 0xc6f   :  { %v1846_v28 = vmul.f32 %v1835_v25, %v1812_v0 }
 0xc70   :  { %v1839_v29 = vmul.f32 0.5, %v1838_v44 }
 0xc71   :  { %v1849_v30 = vmul.f32 %v1848_v55, %v1846_v28 }
 0xc72   :  { %v1840_v33 = vsub.f32 1.5, %v1839_v29 }
 0xc73   :  { %v1852_v1 = vadd.f32 %v1851_v27, %v1849_v30 }
 0xc74   :  { %v1841_v34 = vmul.f32 %v2197_v23, %v1840_v33 }
 0xc75   :  { %1854 = vst.msk [vmem:[%s2737_s13] sm:$0xff] %vm78_vm0, %v1852_v1 }
 0xc76   :  { %v1845_v9 = vsel %vm1844_vm8, %v2197_v23, %v1841_v34 }
 0xc77   :  { %v1847_v2 = vmul.f32 %v1845_v9, %v1813_v6 }
 0xc79   :  { %v1850_v15 = vmul.f32 %v1848_v55, %v1847_v2 }
 0xc7b   :  { %v1853_v35 = vadd.f32 %v1851_v27, %v1850_v15 }
 0xc7d   :  { %1855 = vst.msk [vmem:[%s2737_s13 + $0x8] sm:$0xff] %vm78_vm0, %v1853_v35 }

</bundles_post_ra>
